<compile_context>
chip_gen: v5e
topology: v5e:2x2
jax: 0.10.0
libtpu: 0.0.40
codegen_flags: <defaults>
</compile_context>

<pallas_src>
import math

import jax
import jax.numpy as jnp
from jax.experimental import pallas as pl
from jax.experimental.pallas import tpu as pltpu


def _round_up(x, m):
    return (x + m - 1) // m * m


# ---------------------------------------------------------------------------
# Pallas kernel: Hash_Tensor_Render MLP with basis_mat folded into layer 1.
# Layout is feature-major: x_ref is (56, TM); every grid step emits a (1, TM)
# lane-dense row of sigma logits.
# ---------------------------------------------------------------------------
def _fused_density_kernel(x_ref, w1_ref, b1_ref, w2_ref, b2_ref,
                          w3_ref, b3_ref, w4_ref, b4_ref, o_ref):
    # Upcast the (optionally bf16) activation stream; all arithmetic stays f32.
    x = x_ref[...].astype(jnp.float32)                                   # (56, TM)
    h = jnp.maximum(jnp.dot(w1_ref[...], x,
                            preferred_element_type=jnp.float32) + b1_ref[...], 0.0)
    h = jnp.maximum(jnp.dot(w2_ref[...], h,
                            preferred_element_type=jnp.float32) + b2_ref[...], 0.0)
    h = jnp.maximum(jnp.dot(w3_ref[...], h,
                            preferred_element_type=jnp.float32) + b3_ref[...], 0.0)
    # Final 32 -> 1 layer as broadcast-multiply + cross-sublane reduce: result is
    # already lane-dense (1, TM), avoiding an M=1 MXU push and any sublane->lane relayout.
    y = jnp.sum(h * w4_ref[...], axis=0, keepdims=True) + b4_ref[...]    # (1, TM)
    o_ref[...] = y[None]                                                 # (1, 1, TM)


def fused_density_mlp(x_t, params, tm=1024):
    """x_t: (56, N) feature-major fused activations -> (N, 1) sigma logits (f32)."""
    C, N = x_t.shape
    tm = _round_up(min(tm, _round_up(N, 128)), 128)
    n_pad = (-N) % tm
    if n_pad:  # only the single fused stream is ever padded (and only if needed)
        x_t = jnp.pad(x_t, ((0, 0), (0, n_pad)))
    npad = N + n_pad
    g = npad // tm
    w1, b1, w2, b2, w3, b3, w4, b4 = params
    hidden = w2.shape[0]

    def full_spec(a):
        return pl.BlockSpec(a.shape, lambda i: (0,) * a.ndim)

    cost = pl.CostEstimate(
        flops=int(npad) * 2 * (C * hidden + 2 * hidden * hidden + hidden),
        transcendentals=0,
        bytes_accessed=int(npad) * (C * x_t.dtype.itemsize + 4)
                       + sum(int(w.size) * 4 for w in params))

    out = pl.pallas_call(
        _fused_density_kernel,
        out_shape=jax.ShapeDtypeStruct((g, 1, tm), jnp.float32),
        grid=(g,),
        in_specs=[pl.BlockSpec((C, tm), lambda i: (0, i))]
                 + [full_spec(w) for w in params],
        out_specs=pl.BlockSpec((1, 1, tm), lambda i: (i, 0, 0)),
        compiler_params=pltpu.CompilerParams(dimension_semantics=("parallel",)),
        cost_estimate=cost,
    )(x_t, *params)
    return out.reshape(-1)[:N].reshape(N, 1)


# ---------------------------------------------------------------------------
# Plain-JAX glue (data-dependent gathers): grid_sample on planes/lines and the
# multiresolution hash encoding. Feature-major outputs (C, N) feed the kernel
# with no extra transposes.
# ---------------------------------------------------------------------------
def _bilinear_sample_t(plane, uv):
    # plane: (C, H, W); uv: (N, 2) in [-1, 1]; align_corners=True. Returns (C, N).
    C, Hh, Ww = plane.shape
    u = jnp.clip(uv[:, 0], -1.0, 1.0)
    v = jnp.clip(uv[:, 1], -1.0, 1.0)
    x = (u + 1.0) * 0.5 * (Ww - 1)
    y = (v + 1.0) * 0.5 * (Hh - 1)
    x0 = jnp.clip(jnp.floor(x), 0, Ww - 2).astype(jnp.int32)
    y0 = jnp.clip(jnp.floor(y), 0, Hh - 2).astype(jnp.int32)
    wx = x - x0
    wy = y - y0
    p00 = plane[:, y0, x0]
    p01 = plane[:, y0, x0 + 1]
    p10 = plane[:, y0 + 1, x0]
    p11 = plane[:, y0 + 1, x0 + 1]
    return (p00 * (1 - wy) * (1 - wx) + p01 * (1 - wy) * wx
            + p10 * wy * (1 - wx) + p11 * wy * wx)                       # (C, N)


def _line_sample_t(line, t):
    # line: (C, L); t: (N,) in [-1, 1]; align_corners=True. Returns (C, N).
    C, L = line.shape
    t = jnp.clip(t, -1.0, 1.0)
    z = (t + 1.0) * 0.5 * (L - 1)
    z0 = jnp.clip(jnp.floor(z), 0, L - 2).astype(jnp.int32)
    wz = z - z0
    return line[:, z0] * (1 - wz) + line[:, z0 + 1] * wz                 # (C, N)


def _linear_init(key, fan_in, fan_out):
    bound = 1.0 / math.sqrt(fan_in)
    kw, kb = jax.random.split(key)
    w = jax.random.uniform(kw, (fan_in, fan_out), jnp.float32, -bound, bound)
    b = jax.random.uniform(kb, (1, fan_out), jnp.float32, -bound, bound)
    return w, b


class TensorBaseJAX:
    """JAX/Pallas re-implementation of TensorBase.forward (Hash_Tensor, is_mlp path)."""

    def __init__(self, aabb, gridSize, density_n_comp=8, density_dim=27,
                 tensor_level=1, featureC=32, num_levels=16, level_dim=2,
                 base_resolution=16, log2_hashmap_size=19, bound=0.3,
                 stream_dtype=jnp.bfloat16, tm=1024, seed=0):
        self.bound = bound
        self.tensor_level = tensor_level
        self.density_n_comp = density_n_comp
        self.density_dim = density_dim
        self.num_levels = num_levels
        self.level_dim = level_dim
        self.stream_dtype = stream_dtype   # jnp.float32 for bit-exact f32 parity
        self.tm = tm                       # sweep 512 / 1024 / 2048
        self.aabb = jnp.asarray(aabb, jnp.float32)
        self.aabbSize = self.aabb[1] - self.aabb[0]
        self.invaabbSize = 2.0 / self.aabbSize
        self.matMode = [[0, 1], [0, 2], [1, 2]]
        self.vecMode = [2, 1, 0]

        key = jax.random.PRNGKey(seed)
        ks = list(jax.random.split(key, 16))

        # --- init_svd_volume: density planes / lines (VM decomposition) ---
        self.density_plane = [
            0.1 * jax.random.normal(ks[i],
                                    (density_n_comp, gridSize[m[1]], gridSize[m[0]]),
                                    jnp.float32)
            for i, m in enumerate(self.matMode)]
        self.density_line = [
            0.1 * jax.random.normal(ks[3 + i], (density_n_comp, gridSize[v]), jnp.float32)
            for i, v in enumerate(self.vecMode)]
        # basis_mat: Linear(3*n_comp -> density_dim, bias=False)
        self.wb, _ = _linear_init(ks[6], 3 * density_n_comp, density_dim)

        # --- hashgrid encoder: 16 levels x 2 dims, all tables stacked ---
        self.hash_out_dim = num_levels * level_dim
        self.table_size = 2 ** log2_hashmap_size
        growth = math.exp(math.log(2048.0 / base_resolution) / (num_levels - 1))
        self.resolutions = [int(math.floor(base_resolution * growth ** l))
                            for l in range(num_levels)]
        self.resolutions_f = jnp.asarray(self.resolutions, jnp.float32)
        self.resolutions_u = jnp.asarray(self.resolutions, jnp.uint32)
        tables = 1e-4 * jax.random.uniform(
            ks[7], (num_levels, self.table_size, level_dim), jnp.float32, -1.0, 1.0)
        self.hash_tables_t = jnp.transpose(tables, (0, 2, 1))   # (L, 2, T)

        # --- Hash_Tensor_Render MLP: 4 layers, hidden 32, skips=[] (raw params) ---
        in_dim = self.hash_out_dim + density_dim * tensor_level  # 32 + 27 = 59
        self.w1, self.b1 = _linear_init(ks[8], in_dim, featureC)
        self.w2, self.b2 = _linear_init(ks[9], featureC, featureC)
        self.w3, self.b3 = _linear_init(ks[10], featureC, featureC)
        self.w4, self.b4 = _linear_init(ks[11], featureC, 1)

        # Fold basis_mat into layer 1 (exact in real arithmetic): (p@wb)@w1s == p@(wb@w1s).
        w1h = self.w1[:self.hash_out_dim]                # acts on hash features  (32, 32)
        w1s = self.w1[self.hash_out_dim:]                # acts on sigma_feature  (27, 32)
        w1_folded = jnp.concatenate([w1h, self.wb @ w1s], axis=0)   # (56, 32)
        # Kernel params in feature-major orientation.
        self.kernel_params = (w1_folded.T, self.b1.T, self.w2.T, self.b2.T,
                              self.w3.T, self.b3.T, self.w4, self.b4)

    # --- coordinate helpers -------------------------------------------------
    def normalize_coord(self, xyz):
        return (xyz - self.aabb[0]) * self.invaabbSize - 1.0

    # --- feature extraction (plain-JAX gathers) ------------------------------
    def _plane_line_features_t(self, xyz_norm):
        # compute_densityfeature_with_mlp (pre-basis): plane*line components, (3*n_comp, N)
        feats = []
        for i in range(3):
            uv = xyz_norm[:, self.matMode[i]]
            t = xyz_norm[:, self.vecMode[i]]
            pf = _bilinear_sample_t(self.density_plane[i], uv)
            lf = _line_sample_t(self.density_line[i], t)
            feats.append(pf * lf)
        return jnp.concatenate(feats, axis=0)

    def _hash_encode_t(self, xyz):
        # Vectorized multiresolution hash encoding: 8 batched gathers total. Returns (32, N).
        # NOTE: every level is hashed (no dense fallback for coarse levels), matching v1.
        n = xyz.shape[0]
        x01 = jnp.clip((xyz / self.bound) * 0.5 + 0.5, 0.0, 1.0)              # (N, 3)
        pos = x01[None, :, :] * (self.resolutions_f[:, None, None] - 1.0)     # (L, N, 3)
        pos0f = jnp.floor(pos)
        frac = pos - pos0f
        pos0 = pos0f.astype(jnp.uint32)
        primes = jnp.array([1, 2654435761, 805459861], dtype=jnp.uint32)
        tmask = jnp.uint32(self.table_size - 1)
        L, D = self.num_levels, self.level_dim
        l_idx = jnp.arange(L, dtype=jnp.int32)[:, None, None]                 # (L, 1, 1)
        c_idx = jnp.arange(D, dtype=jnp.int32)[None, :, None]                 # (1, D, 1)
        res_m1 = self.resolutions_u[:, None, None] - jnp.uint32(1)            # (L, 1, 1)

        acc = jnp.zeros((L, D, n), jnp.float32)
        for c in range(8):                                                    # static corner loop
            offs = jnp.array([(c >> d) & 1 for d in range(3)], dtype=jnp.uint32)
            corner = jnp.minimum(pos0 + offs[None, None, :], res_m1)          # (L, N, 3)
            idx = ((corner[..., 0] * primes[0])
                   ^ (corner[..., 1] * primes[1])
                   ^ (corner[..., 2] * primes[2])) & tmask                    # (L, N)
            offs_f = offs.astype(jnp.float32)[None, None, :]
            w = jnp.prod(offs_f * frac + (1.0 - offs_f) * (1.0 - frac), axis=-1)
            g = self.hash_tables_t[l_idx, c_idx, idx.astype(jnp.int32)[:, None, :]]  # (L,D,N)
            acc = acc + w[:, None, :] * g
        return acc.reshape(L * D, n)                                          # (32, N)

    # --- forward --------------------------------------------------------------
    def forward(self, xyz_sampled):
        # store_way == 'Hash_Tensor', is_mlp == 'True', tensor_level == 1:
        #   sigma_features = cat([compute_densityfeature_with_mlp(xyz, l)], dim=1)
        #   valid_sigma    = renderModule(xyz, sigma_features)
        # TODO(synk): the grid_sample / hash-table gathers are data-dependent gathers and
        # stay in (vectorized) plain JAX; the fused basis+render MLP runs in the Pallas kernel.
        xyz_norm = self.normalize_coord(xyz_sampled)
        p_t = self._plane_line_features_t(xyz_norm)     # (24, N)
        h_t = self._hash_encode_t(xyz_sampled)          # (32, N)
        x_t = jnp.concatenate([h_t, p_t], axis=0).astype(self.stream_dtype)   # (56, N)
        return fused_density_mlp(x_t, self.kernel_params, tm=self.tm)         # (N, 1)

    # --- pure-JAX, unfolded f32 reference (for tolerance checks) --------------
    def reference_forward(self, xyz_sampled):
        xyz_norm = self.normalize_coord(xyz_sampled)
        p = self._plane_line_features_t(xyz_norm).T                           # (N, 24)
        h = self._hash_encode_t(xyz_sampled).T                                # (N, 32)
        sigma_feat = p @ self.wb                                              # (N, 27)
        x = jnp.concatenate([h, sigma_feat], axis=-1)                         # (N, 59)
        x = jax.nn.relu(x @ self.w1 + self.b1)
        x = jax.nn.relu(x @ self.w2 + self.b2)
        x = jax.nn.relu(x @ self.w3 + self.b3)
        return x @ self.w4 + self.b4                                          # (N, 1)


if __name__ == "__main__":
    key = jax.random.PRNGKey(0)
    aabb = jnp.array([[-0.3, -0.3, -0.3], [0.3, 0.3, 0.3]], jnp.float32)
    model = TensorBaseJAX(aabb, gridSize=[32, 32, 32])

    N = 4096  # multiple of TM=1024 -> 4 grid steps, no pad copy
    xyz = jax.random.uniform(key, (N, 3), jnp.float32, minval=-0.3, maxval=0.3)

    sigma = jax.block_until_ready(model.forward(xyz))
    assert sigma.shape == (N, 1) and sigma.dtype == jnp.float32
    assert bool(jnp.all(jnp.isfinite(sigma)))

    # Tolerance check vs. the unfolded pure-JAX f32 reference (difference comes only from
    # bf16 streaming of the activations and f32 rounding-order of the basis fold).
    ref = jax.block_until_ready(model.reference_forward(xyz))
    assert float(jnp.max(jnp.abs(sigma - ref))) < 2e-2

    print("KERNEL_OK")
</pallas_src>

<mosaic_0001>
module attributes {stable_mosaic.version = 11 : i64} {
  func.func @_fused_density_kernel(%arg0: i32, %arg1: memref<56x1024xbf16, #tpu.memory_space<vmem>>, %arg2: memref<32x56xf32, #tpu.memory_space<vmem>>, %arg3: memref<32x1xf32, #tpu.memory_space<vmem>>, %arg4: memref<32x32xf32, #tpu.memory_space<vmem>>, %arg5: memref<32x1xf32, #tpu.memory_space<vmem>>, %arg6: memref<32x32xf32, #tpu.memory_space<vmem>>, %arg7: memref<32x1xf32, #tpu.memory_space<vmem>>, %arg8: memref<32x1xf32, #tpu.memory_space<vmem>>, %arg9: memref<1x1xf32, #tpu.memory_space<vmem>>, %arg10: memref<1x1x1024xf32, #tpu.memory_space<vmem>>) attributes {dimension_semantics = [#tpu.dimension_semantics<parallel>], iteration_bounds = array<i64: 4>, scalar_prefetch = 0 : i64, scratch_operands = 0 : i64, tpu.core_type = #tpu.core_type<tc>, window_params = [{transform_indices = @transform_0, window_bounds = array<i64: 56, 1024>}, {pipeline_mode = #tpu.pipeline_mode<synchronous>, transform_indices = @transform_1, window_bounds = array<i64: 32, 56>}, {pipeline_mode = #tpu.pipeline_mode<synchronous>, transform_indices = @transform_2, window_bounds = array<i64: 32, 1>}, {pipeline_mode = #tpu.pipeline_mode<synchronous>, transform_indices = @transform_3, window_bounds = array<i64: 32, 32>}, {pipeline_mode = #tpu.pipeline_mode<synchronous>, transform_indices = @transform_4, window_bounds = array<i64: 32, 1>}, {pipeline_mode = #tpu.pipeline_mode<synchronous>, transform_indices = @transform_5, window_bounds = array<i64: 32, 32>}, {pipeline_mode = #tpu.pipeline_mode<synchronous>, transform_indices = @transform_6, window_bounds = array<i64: 32, 1>}, {pipeline_mode = #tpu.pipeline_mode<synchronous>, transform_indices = @transform_7, window_bounds = array<i64: 32, 1>}, {pipeline_mode = #tpu.pipeline_mode<synchronous>, transform_indices = @transform_8, window_bounds = array<i64: 1, 1>}, {transform_indices = @transform_9, window_bounds = array<i64: 1, 1, 1024>}]} {
    %c0 = arith.constant 0 : index
    %c0_0 = arith.constant 0 : index
    %0 = vector.load %arg1[%c0, %c0_0] : memref<56x1024xbf16, #tpu.memory_space<vmem>>, vector<56x1024xbf16>
    %1 = arith.extf %0 : vector<56x1024xbf16> to vector<56x1024xf32>
    %c0_1 = arith.constant 0 : index
    %c0_2 = arith.constant 0 : index
    %2 = vector.load %arg2[%c0_1, %c0_2] : memref<32x56xf32, #tpu.memory_space<vmem>>, vector<32x56xf32>
    %cst = arith.constant dense<0.000000e+00> : vector<32x1024xf32>
    %3 = tpu.matmul %2, %1, %cst {dimension_numbers = #tpu.dot_dimension_numbers<[1], [0], [0], [1], [0, 0, 1, 1], [], []>} : vector<32x56xf32>, vector<56x1024xf32>, vector<32x1024xf32> -> vector<32x1024xf32>
    %c0_3 = arith.constant 0 : index
    %c0_4 = arith.constant 0 : index
    %4 = vector.load %arg3[%c0_3, %c0_4] : memref<32x1xf32, #tpu.memory_space<vmem>>, vector<32x1xf32>
    %5 = vector.broadcast %4 : vector<32x1xf32> to vector<32x1024xf32>
    %6 = arith.addf %3, %5 : vector<32x1024xf32>
    %cst_5 = arith.constant 0.000000e+00 : f32
    %7 = vector.broadcast %cst_5 : f32 to vector<32x1024xf32>
    %8 = arith.maximumf %6, %7 : vector<32x1024xf32>
    %c0_6 = arith.constant 0 : index
    %c0_7 = arith.constant 0 : index
    %9 = vector.load %arg4[%c0_6, %c0_7] : memref<32x32xf32, #tpu.memory_space<vmem>>, vector<32x32xf32>
    %cst_8 = arith.constant dense<0.000000e+00> : vector<32x1024xf32>
    %10 = tpu.matmul %9, %8, %cst_8 {dimension_numbers = #tpu.dot_dimension_numbers<[1], [0], [0], [1], [0, 0, 1, 1], [], []>} : vector<32x32xf32>, vector<32x1024xf32>, vector<32x1024xf32> -> vector<32x1024xf32>
    %c0_9 = arith.constant 0 : index
    %c0_10 = arith.constant 0 : index
    %11 = vector.load %arg5[%c0_9, %c0_10] : memref<32x1xf32, #tpu.memory_space<vmem>>, vector<32x1xf32>
    %12 = vector.broadcast %11 : vector<32x1xf32> to vector<32x1024xf32>
    %13 = arith.addf %10, %12 : vector<32x1024xf32>
    %cst_11 = arith.constant 0.000000e+00 : f32
    %14 = vector.broadcast %cst_11 : f32 to vector<32x1024xf32>
    %15 = arith.maximumf %13, %14 : vector<32x1024xf32>
    %c0_12 = arith.constant 0 : index
    %c0_13 = arith.constant 0 : index
    %16 = vector.load %arg6[%c0_12, %c0_13] : memref<32x32xf32, #tpu.memory_space<vmem>>, vector<32x32xf32>
    %cst_14 = arith.constant dense<0.000000e+00> : vector<32x1024xf32>
    %17 = tpu.matmul %16, %15, %cst_14 {dimension_numbers = #tpu.dot_dimension_numbers<[1], [0], [0], [1], [0, 0, 1, 1], [], []>} : vector<32x32xf32>, vector<32x1024xf32>, vector<32x1024xf32> -> vector<32x1024xf32>
    %c0_15 = arith.constant 0 : index
    %c0_16 = arith.constant 0 : index
    %18 = vector.load %arg7[%c0_15, %c0_16] : memref<32x1xf32, #tpu.memory_space<vmem>>, vector<32x1xf32>
    %19 = vector.broadcast %18 : vector<32x1xf32> to vector<32x1024xf32>
    %20 = arith.addf %17, %19 : vector<32x1024xf32>
    %cst_17 = arith.constant 0.000000e+00 : f32
    %21 = vector.broadcast %cst_17 : f32 to vector<32x1024xf32>
    %22 = arith.maximumf %20, %21 : vector<32x1024xf32>
    %c0_18 = arith.constant 0 : index
    %c0_19 = arith.constant 0 : index
    %23 = vector.load %arg8[%c0_18, %c0_19] : memref<32x1xf32, #tpu.memory_space<vmem>>, vector<32x1xf32>
    %24 = vector.broadcast %23 : vector<32x1xf32> to vector<32x1024xf32>
    %25 = arith.mulf %22, %24 : vector<32x1024xf32>
    %cst_20 = arith.constant dense<0.000000e+00> : vector<1024xf32>
    %26 = vector.multi_reduction <add>, %25, %cst_20 [0] : vector<32x1024xf32> to vector<1024xf32>
    %27 = vector.shape_cast %26 : vector<1024xf32> to vector<1x1024xf32>
    %c0_21 = arith.constant 0 : index
    %c0_22 = arith.constant 0 : index
    %28 = vector.load %arg9[%c0_21, %c0_22] : memref<1x1xf32, #tpu.memory_space<vmem>>, vector<1x1xf32>
    %29 = vector.broadcast %28 : vector<1x1xf32> to vector<1x1024xf32>
    %30 = arith.addf %27, %29 : vector<1x1024xf32>
    %31 = vector.shape_cast %30 : vector<1x1024xf32> to vector<1x1x1024xf32>
    %c0_23 = arith.constant 0 : index
    %c0_24 = arith.constant 0 : index
    %c0_25 = arith.constant 0 : index
    %32 = vector.load %arg10[%c0_23, %c0_24, %c0_25] : memref<1x1x1024xf32, #tpu.memory_space<vmem>>, vector<1x1x1024xf32>
    tpu.vector_store %arg10[%c0_23, %c0_24, %c0_25], %31 {strides = array<i32>} : memref<1x1x1024xf32, #tpu.memory_space<vmem>>, vector<1x1x1024xf32>,
    return
  }
  func.func @transform_0(%arg0: i32) -> (i32, i32) {
    %c0_i32 = arith.constant 0 : i32
    %c0_i32_0 = arith.constant 0 : i32
    return %c0_i32, %arg0 : i32, i32
  }
  func.func @transform_1(%arg0: i32) -> (i32, i32) {
    %c0_i32 = arith.constant 0 : i32
    %c0_i32_0 = arith.constant 0 : i32
    %c0_i32_1 = arith.constant 0 : i32
    return %c0_i32, %c0_i32_0 : i32, i32
  }
  func.func @transform_2(%arg0: i32) -> (i32, i32) {
    %c0_i32 = arith.constant 0 : i32
    %c0_i32_0 = arith.constant 0 : i32
    %c0_i32_1 = arith.constant 0 : i32
    return %c0_i32, %c0_i32_0 : i32, i32
  }
  func.func @transform_3(%arg0: i32) -> (i32, i32) {
    %c0_i32 = arith.constant 0 : i32
    %c0_i32_0 = arith.constant 0 : i32
    %c0_i32_1 = arith.constant 0 : i32
    return %c0_i32, %c0_i32_0 : i32, i32
  }
  func.func @transform_4(%arg0: i32) -> (i32, i32) {
    %c0_i32 = arith.constant 0 : i32
    %c0_i32_0 = arith.constant 0 : i32
    %c0_i32_1 = arith.constant 0 : i32
    return %c0_i32, %c0_i32_0 : i32, i32
  }
  func.func @transform_5(%arg0: i32) -> (i32, i32) {
    %c0_i32 = arith.constant 0 : i32
    %c0_i32_0 = arith.constant 0 : i32
    %c0_i32_1 = arith.constant 0 : i32
    return %c0_i32, %c0_i32_0 : i32, i32
  }
  func.func @transform_6(%arg0: i32) -> (i32, i32) {
    %c0_i32 = arith.constant 0 : i32
    %c0_i32_0 = arith.constant 0 : i32
    %c0_i32_1 = arith.constant 0 : i32
    return %c0_i32, %c0_i32_0 : i32, i32
  }
  func.func @transform_7(%arg0: i32) -> (i32, i32) {
    %c0_i32 = arith.constant 0 : i32
    %c0_i32_0 = arith.constant 0 : i32
    %c0_i32_1 = arith.constant 0 : i32
    return %c0_i32, %c0_i32_0 : i32, i32
  }
  func.func @transform_8(%arg0: i32) -> (i32, i32) {
    %c0_i32 = arith.constant 0 : i32
    %c0_i32_0 = arith.constant 0 : i32
    %c0_i32_1 = arith.constant 0 : i32
    return %c0_i32, %c0_i32_0 : i32, i32
  }
  func.func @transform_9(%arg0: i32) -> (i32, i32, i32) {
    %c0_i32 = arith.constant 0 : i32
    %c0_i32_0 = arith.constant 0 : i32
    %c0_i32_1 = arith.constant 0 : i32
    return %arg0, %c0_i32, %c0_i32_0 : i32, i32, i32
  }
}

</mosaic_0001>

<bundles_post_ra>
// kernel: tpu_custom_call.1
= control target key start
LH: loop header
LB: loop body
LE: loop exit
PB: predicated region body
PF: predicated region fallthrough
CT: control target
= control target key end

     0   :  { %s2565_s0 = inlined_call_operand.hbm [shape: bf16[56,4096], index: 0, kind: input, shape index: {}]   ;;  %s2566_s1 = inlined_call_operand.vmem [shape: f32[32,56], index: 1, kind: input, shape index: {}]   ;;  %s2567_s2 = inlined_call_operand.vmem [shape: f32[32,1], index: 2, kind: input, shape index: {}]   ;;  %s2568_s3 = inlined_call_operand.vmem [shape: f32[32,32], index: 3, kind: input, shape index: {}]   ;;  %s2569_s4 = inlined_call_operand.vmem [shape: f32[32,1], index: 4, kind: input, shape index: {}]   ;;  %s2570_s5 = inlined_call_operand.vmem [shape: f32[32,32], index: 5, kind: input, shape index: {}]   ;;  %s2571_s6 = inlined_call_operand.vmem [shape: f32[32,1], index: 6, kind: input, shape index: {}]   ;;  %s2572_s7 = inlined_call_operand.vmem [shape: f32[32,1], index: 7, kind: input, shape index: {}]   ;;  %s2573_s8 = inlined_call_operand.<no memory space> [shape: f32[1,1], index: 8, kind: input, shape index: {}]   ;;  %s2574_s9 = inlined_call_operand.hbm [shape: f32[4,1,1024], index: 9, kind: output, shape index: {}]  }
   0x1   :  { %v14_v0 = vstv %s2573_s8 }
   0x2   :  { %15 = vst [vmem:[#allocation2] sm:$0x1] %v14_v0 }
   0x3   :  { %16 = vsyncpa [#allocation4], 0 }
   0x4   :  { %18 = vsyncpa [#allocation4 + $0x1], 0 }
   0x5   :  { %19 = vsyncpa [#allocation5], 0 }
   0x6   :  { %21 = vsyncpa [#allocation5 + $0x1], 0  ;;  %s1932_s11 = smov 0   ;;  %s1934_s12 = smov 0  }
   0x7   :  { %s1936_s13 = smov 0   ;;  %s1938_s14 = smov 0  }
   0x8 LB: > { %2576 = sst [smem:[#allocation9_spill]] %s1869_s13  ;;  %s1953_s8 = sadd.s32 4294967295, %s1873_s14   ;;  %s1873_s14 = sphi %s1938_s14, %s2586_s14   ;;  %s1869_s13 = sphi %s1936_s13, %s2583_s13   ;;  %s1865_s12 = sphi %s1934_s12, %s2585_s12   ;;  %s1861_s11 = sphi %s1932_s11, %s2584_s11  }
   0x9   : > { %s1614_s15 = sadd.s32 4294967294, %s1873_s14   ;;  %s1957_s16 = sadd.s32 1, %s1873_s14  }
   0xa   : > { %s34_s17 = sadd.s32 1, %s1869_s13  ;;  %s31_s18 = ssub.s32 %s1873_s14, %s1957_s16 }
   0xb   : > { %p41_p0 = scmp.ne.s32.totalorder %s1869_s13, %s1865_s12  ;;  %p32_p1 = scmp.eq.s32.totalorder %s31_s18, 0 }
   0xc   : > { %p42_p2 = scmp.eq.s32.totalorder %s1873_s14, 0  ;;  %p47_p3 = scmp.ne.s32.totalorder %s1865_s12, %s1861_s11 }
   0xd   : > { %p48_p4 = scmp.eq.s32.totalorder %s1953_s8, 0  ;;  %p239_p7 = scmp.eq.s32.totalorder %s1953_s8, 3 }
   0xe   : > { %s1969_s19 = scalar_select %p32_p1, %s1869_s13, %s34_s17  }
   0xf   : > { %p43_p5 = por %p42_p2, %p41_p0  ;;  %p1971_p6 = por %p48_p4, %p47_p3 }
  0x10   : > { %2577 = sst [smem:[#allocation10_spill]] %s1969_s19  ;;  %p245_p8 = scmp.eq.s32.totalorder %s1614_s15, 3 }
  0x11   : > { %p1736_p9 = scmp.lt.s32.totalorder %s1873_s14, 4  ;;  %p1977_p10 = por %p239_p7, %p41_p0 }
  0x12   : > { %p1981_p11 = por %p245_p8, %p47_p3  ;;  %s289_s23 = sand.u32 1, %s1869_s13  }
  0x13   : > { %s1721_s24 = sshll.u32 %s1873_s14, 5  ;;  %s1722_s25 = smul.u32 224, %s289_s23 }
  0x14   : > { %s298_s28 = scalar_lea.hbm %s2565_s0, %s1721_s24  ;;  %p1990_p12 = pnand %p1736_p9, %p43_p5 }
  0x15   : > { %s299_s30 = sshll.u32 %s298_s28, 4  ;;  %s293_s10 = scalar_lea.vmem [#allocation3], %s1722_s25  ;;  %s300_s30 = int_to_ptr.hbm [resolvable:$true] %s299_s30 }
  0x16   : > { %s301_s15 = sshll.u32 %s293_s10, 4  ;;  %p1619_p13 = scmp.ge.s32.totalorder %s1873_s14, 1  ;;  %s302_s15 = int_to_ptr.vmem [resolvable:$true] %s301_s15 }
  0x17   : > { %s290_s17 = scalar_lea.sflag [#allocation4], %s289_s23  ;;  %s1777_s18 = sshra.s32 %s300_s30, 4  ;;  %s1778_s18 = int_to_ptr.hbm [resolvable:$true] %s1777_s18 }
  0x18   : > { %s1779_s19 = scalar_lea.hbm %s1778_s18, 224  ;;  %p1781_p1 = pneg %p1990_p12 }
  0x19   : > { %p1780_p0 = scmp.ne.s32.totalorder %s1778_s18, %s1779_s19  ;;  %s1784_s27 = scalar_lea.hbm %s2565_s0, 896 }
  0x1a   : > { %p1785_p4 = scmp.lt.s32.totalorder %s1778_s18, %s2565_s0  ;;  %p1786_p5 = scmp.lt.s32.totalorder %s1784_s27, %s1779_s19 }
  0x1b   : > { %p1782_p2 = pnand %p1781_p1, %p1780_p0 }
  0x1c   : > { %p1787_p7 = por %p1786_p5, %p1785_p4 }
  0x1d   : > { %p1783_p3 = pneg %p1782_p2 }
  0x1f   : > { %p1788_p8 = pnand %p1787_p7, %p1783_p3 }
  0x21   : > { %1791 = shalt.err (!%p1788_p8)
}
  0x22   : > { %s1875_s23 = smov 2048   ;;  %s1876_s25 = smov 512  }
  0x23   : > { %s1877_s10 = smov 32   ;;  %p309_p9 = scmp.lt.s32.totalorder %s1873_s14, 5 }
  0x24   : > { %1731 = dma.hbm_to_vmem [thread:$0]  (!%p1990_p12), %s300_s30, 3584, %s302_s15, %s290_s17, %s1875_s23, %s1876_s25, %s1877_s10  }
  0x25   : > { %p310_p0 = pnand %p1619_p13, %p309_p9 }
  0x26   : > { %s2009_s13 = sand.u32 (!%p310_p0), 1, %s1865_s12  }
  0x27   : > { %313 = sbr.rel (%p310_p0) target bundleno = 617 (0x269), region = 56  ;;  %s316_s18 = scalar_lea.sflag (!%p310_p0), [#allocation4], %s2009_s13 }
  0x28   : > { %s1723_s19 = smul.u32 (!%p310_p0), 224, %s2009_s13 }
  0x2a   : > { %s2013_s24 = scalar_lea.vmem (!%p310_p0), [#allocation3], %s1723_s19 }
  0x2c   : > { %1852 = dma.done.wait (%p1971_p6), %s316_s18, 3584  }
  0x2d   : > { %1854 = vsyncadd (%p1971_p6), %s316_s18, 4294963712  ;;  %v1878_v1 = vmov 0   ;;  %v380_v2 = vld [vmem:[%s2013_s24 + $0xc0] sm:$0xff]  ;;  %v381_v3 = vld [vmem:[%s2013_s24 + $0xc8] sm:$0xff]  ;;  %vm468_vm0 = vcmask 457728   ;;  %vm773_vm1 = vcmask 261120  }
  0x2e   : > { %1774 = vset.pattern.permute.xlu0 %v1878_v1  ;;  %1775 = vset.pattern.permute.xlu1 %v1878_v1  ;;  %v376_v4 = vld [vmem:[%s2013_s24 + $0xa0] sm:$0xff]  ;;  %v432_v5 = vunpack.c.l.bf16 %v380_v2  ;;  %v433_v6 = vunpack.c.h.bf16 %v380_v2  ;;  %v434_v7 = vunpack.c.l.bf16 %v381_v3  ;;  %v435_v8 = vunpack.c.h.bf16 %v381_v3  ;;  %v377_v9 = vld [vmem:[%s2013_s24 + $0xa8] sm:$0xff]  ;;  %v447_v31 = vld [vmem:[%s2567_s2 + $0x18] sm:$0xff]  ;;  %s1620_s29 = sshll.u32 %s2009_s13, 3  ;;  %s1718_s30 = sshll.u32 %s1953_s8, 3 }
  0x2f   : > { %1776 = vset.pattern.permute.xlu2 %v1878_v1  ;;  %v372_v10 = vld [vmem:[%s2013_s24 + $0x80] sm:$0xff]  ;;  %v373_v11 = vld [vmem:[%s2013_s24 + $0x88] sm:$0xff]  ;;  %v424_v12 = vunpack.c.l.bf16 %v376_v4  ;;  %v425_v13 = vunpack.c.h.bf16 %v376_v4  ;;  %v426_v14 = vunpack.c.l.bf16 %v377_v9  ;;  %v427_v15 = vunpack.c.h.bf16 %v377_v9  ;;  %465 = vperm.xlu0 %1774, %v447_v31   ;;  %v382_v46 = vld [vmem:[%s2013_s24 + $0xd0] sm:$0xff]  ;;  %s1539_s26 = scalar_lea.hbm %s2574_s9, %s1718_s30  ;;  %s354_s8 = scalar_lea.vmem [#allocation6], %s1620_s29 }
  0x30   : > { %v368_v16 = vld [vmem:[%s2013_s24 + $0x60] sm:$0xff]  ;;  %490 = vmatpush.msra.mxu0 %v432_v5  ;;  %519 = vmatpush.msra.mxu1 %v433_v6  ;;  %v416_v17 = vunpack.c.l.bf16 %v372_v10  ;;  %v417_v18 = vunpack.c.h.bf16 %v372_v10  ;;  %v369_v19 = vld [vmem:[%s2013_s24 + $0x68] sm:$0xff]  ;;  %v418_v20 = vunpack.c.l.bf16 %v373_v11  ;;  %v419_v21 = vunpack.c.h.bf16 %v373_v11  ;;  %v383_v47 = vld [vmem:[%s2013_s24 + $0xd8] sm:$0xff]  ;;  %s1541_s27 = sshll.u32 %s354_s8, 4  ;;  %s1543_s28 = sshll.u32 %s1539_s26, 4  ;;  %s1542_s27 = int_to_ptr.vmem [resolvable:$true] %s1541_s27  ;;  %s1544_s28 = int_to_ptr.hbm [resolvable:$true] %s1543_s28 }
  0x31   : > { %548 = vmatpush.msra.mxu2 %v434_v7  ;;  %577 = vmatpush.msra.mxu3 %v435_v8  ;;  %v364_v22 = vld [vmem:[%s2013_s24 + $0x40] sm:$0xff]  ;;  %v408_v23 = vunpack.c.l.bf16 %v368_v16  ;;  %v409_v24 = vunpack.c.h.bf16 %v368_v16  ;;  %v365_v25 = vld [vmem:[%s2013_s24 + $0x48] sm:$0xff]  ;;  %v410_v26 = vunpack.c.l.bf16 %v369_v19  ;;  %v411_v27 = vunpack.c.h.bf16 %v369_v19  ;;  %v378_v49 = vld [vmem:[%s2013_s24 + $0xb0] sm:$0xff]  ;;  %s1529_s23 = scalar_lea.sflag [#allocation5], %s2009_s13  ;;  %s1827_s18 = scalar_lea.hbm %s2574_s9, 32 }
  0x32   : > { %491 = vmatpush.msra.mxu0 %v424_v12  ;;  %520 = vmatpush.msra.mxu1 %v425_v13  ;;  %v360_v28 = vld [vmem:[%s2013_s24 + $0x20] sm:$0xff]  ;;  %v400_v29 = vunpack.c.l.bf16 %v364_v22  ;;  %v361_v30 = vld [vmem:[%s2013_s24 + $0x28] sm:$0xff]  ;;  %v401_v32 = vunpack.c.h.bf16 %v364_v22  ;;  %v402_v33 = vunpack.c.l.bf16 %v365_v25  ;;  %v403_v34 = vunpack.c.h.bf16 %v365_v25  ;;  %v379_v54 = vld [vmem:[%s2013_s24 + $0xb8] sm:$0xff] }
  0x33   : > { %549 = vmatpush.msra.mxu2 %v426_v14  ;;  %578 = vmatpush.msra.mxu3 %v427_v15  ;;  %v392_v35 = vunpack.c.l.bf16 %v360_v28  ;;  %v356_v36 = vld [vmem:[%s2013_s24] sm:$0xff]  ;;  %v393_v37 = vunpack.c.h.bf16 %v360_v28  ;;  %v394_v38 = vunpack.c.l.bf16 %v361_v30  ;;  %v357_v39 = vld [vmem:[%s2013_s24 + $0x8] sm:$0xff]  ;;  %v395_v40 = vunpack.c.h.bf16 %v361_v30  ;;  %v374_v57 = vld [vmem:[%s2013_s24 + $0x90] sm:$0xff] }
  0x34   : > { %492 = vmatpush.msra.mxu0 %v416_v17  ;;  %521 = vmatpush.msra.mxu1 %v417_v18  ;;  %v445_v41 = vld [vmem:[%s2567_s2 + $0x8] sm:$0xff]  ;;  %v384_v42 = vunpack.c.l.bf16 %v356_v36  ;;  %v385_v43 = vunpack.c.h.bf16 %v356_v36  ;;  %v386_v44 = vunpack.c.l.bf16 %v357_v39  ;;  %v387_v45 = vunpack.c.h.bf16 %v357_v39  ;;  %v2044_v48 = vld [vmem:[%s2566_s1] sm:$0xff]  ;;  %v446_v51 = vld [vmem:[%s2567_s2 + $0x10] sm:$0xff] }
  0x35   : > { %550 = vmatpush.msra.mxu2 %v418_v20  ;;  %579 = vmatpush.msra.mxu3 %v419_v21  ;;  %v436_v50 = vunpack.c.l.bf16 %v382_v46  ;;  %v437_v52 = vunpack.c.h.bf16 %v382_v46  ;;  %v438_v53 = vunpack.c.l.bf16 %v383_v47  ;;  %v439_v55 = vunpack.c.h.bf16 %v383_v47  ;;  %v444_v59 = vld [vmem:[%s2567_s2] sm:$0xff]  ;;  %v370_v1 = vld [vmem:[%s2013_s24 + $0x70] sm:$0xff]  ;;  %v2068_v2 = vld [vmem:[%s2566_s1 + $0x8] sm:$0xff] }
  0x36   : > { %493 = vmatpush.msra.mxu0 %v408_v23  ;;  %522 = vmatpush.msra.mxu1 %v409_v24  ;;  %v428_v56 = vunpack.c.l.bf16 %v378_v49  ;;  %v429_v58 = vunpack.c.h.bf16 %v378_v49  ;;  %v430_v60 = vunpack.c.l.bf16 %v379_v54  ;;  %v431_v61 = vunpack.c.h.bf16 %v379_v54  ;;  %v375_v0 = vld [vmem:[%s2013_s24 + $0x98] sm:$0xff]  ;;  %v750_v5 = vld [vmem:[%s2569_s4 + $0x8] sm:$0xff]  ;;  %v366_v8 = vld [vmem:[%s2013_s24 + $0x50] sm:$0xff] }
  0x37   : > { %551 = vmatpush.msra.mxu2 %v410_v26  ;;  %580 = vmatpush.msra.mxu3 %v411_v27  ;;  %v420_v62 = vunpack.c.l.bf16 %v374_v57  ;;  %v421_v63 = vunpack.c.h.bf16 %v374_v57  ;;  %v371_v3 = vld [vmem:[%s2013_s24 + $0x78] sm:$0xff]  ;;  %v422_v4 = vunpack.c.l.bf16 %v375_v0  ;;  %v423_v6 = vunpack.c.h.bf16 %v375_v0  ;;  %v362_v18 = vld [vmem:[%s2013_s24 + $0x30] sm:$0xff]  ;;  %v1055_v23 = vld [vmem:[%s2571_s6 + $0x8] sm:$0xff] }
  0x38   : > { %494 = vmatpush.msra.mxu0 %v400_v29  ;;  %523 = vmatpush.msra.mxu1 %v401_v32  ;;  %v412_v7 = vunpack.c.l.bf16 %v370_v1  ;;  %v413_v9 = vunpack.c.h.bf16 %v370_v1  ;;  %v414_v10 = vunpack.c.l.bf16 %v371_v3  ;;  %v367_v11 = vld [vmem:[%s2013_s24 + $0x58] sm:$0xff]  ;;  %v415_v12 = vunpack.c.h.bf16 %v371_v3  ;;  %v442_v20 = vld [vmem:[%s2566_s1 + $0x10] sm:$0xff] }
  0x39   : > { %552 = vmatpush.msra.mxu2 %v402_v33  ;;  %581 = vmatpush.msra.mxu3 %v403_v34  ;;  %v749_v13 = vld [vmem:[%s2569_s4] sm:$0xff]  ;;  %v404_v14 = vunpack.c.l.bf16 %v366_v8  ;;  %v405_v15 = vunpack.c.h.bf16 %v366_v8  ;;  %v406_v16 = vunpack.c.l.bf16 %v367_v11  ;;  %v407_v17 = vunpack.c.h.bf16 %v367_v11  ;;  %v358_v21 = vld [vmem:[%s2013_s24 + $0x10] sm:$0xff] }
  0x3a   : > { %495 = vmatpush.msra.mxu0 %v392_v35  ;;  %524 = vmatpush.msra.mxu1 %v393_v37  ;;  %v363_v19 = vld [vmem:[%s2013_s24 + $0x38] sm:$0xff]  ;;  %v396_v22 = vunpack.c.l.bf16 %v362_v18  ;;  %v397_v24 = vunpack.c.h.bf16 %v362_v18  ;;  %v388_v28 = vunpack.c.l.bf16 %v358_v21  ;;  %v389_v29 = vunpack.c.h.bf16 %v358_v21  ;;  %v1056_v30 = vld [vmem:[%s2571_s6 + $0x10] sm:$0xff]  ;;  %v1355_v35 = vld [vmem:[%s2572_s7 + $0x8] sm:$0xff] }
  0x3b   : > { %553 = vmatpush.msra.mxu2 %v394_v38  ;;  %582 = vmatpush.msra.mxu3 %v395_v40  ;;  %v398_v25 = vunpack.c.l.bf16 %v363_v19  ;;  %v359_v26 = vld [vmem:[%s2013_s24 + $0x18] sm:$0xff]  ;;  %v399_v27 = vunpack.c.h.bf16 %v363_v19  ;;  %vm1512_vm2 = vcmask 1040384   ;;  %vm1514_vm3 = vcmask 1042434   ;;  %s1821_s24 = sshra.s32 %s1544_s28, 4  ;;  %s1822_s24 = int_to_ptr.hbm [resolvable:$true] %s1821_s24 }
  0x3c   : > { %455 = vperm.xlu1 %1775, %v445_v41   ;;  %496 = vmatpush.msra.mxu0 %v384_v42  ;;  %v390_v31 = vunpack.c.l.bf16 %v359_v26  ;;  %v391_v32 = vunpack.c.h.bf16 %v359_v26  ;;  %v443_v33 = vld [vmem:[%s2566_s1 + $0x18] sm:$0xff]  ;;  %v1354_v34 = vld [vmem:[%s2572_s7] sm:$0xff]  ;;  %vm1516_vm4 = vcmask 1041408   ;;  %vm1518_vm5 = vcmask 1044484   ;;  %s1823_s25 = scalar_lea.hbm %s1822_s24, 8  ;;  %p1828_p1 = scmp.lt.s32.totalorder %s1822_s24, %s2574_s9 }
  0x3d   : > { %525 = vmatpush.msra.mxu1 %v385_v43  ;;  %554 = vmatpush.msra.mxu2 %v386_v44  ;;  %v1357_v36 = vld [vmem:[%s2572_s7 + $0x18] sm:$0xff]  ;;  %v1482_v37 = vld [vmem:[#allocation2] sm:$0x1]  ;;  %vm1520_vm6 = vcmask 1046534   ;;  %vm1522_vm7 = vcmask 1045508   ;;  %vm1524_vm8 = vcmask 1043456   ;;  %p1824_p6 = scmp.ne.s32.totalorder %s1822_s24, %s1823_s25  ;;  %p1829_p2 = scmp.lt.s32.totalorder %s1827_s18, %s1823_s25 }
  0x3e   : > { %583 = vmatpush.msra.mxu3 %v387_v45  ;;  %1621 = vmatmul.msk.f32.vlgmr.msra.gmra.mxu0 %vm468_vm0, %v2044_v48  ;;  %v2172_v19 = vld [vmem:[%s2568_s3] sm:$0xff] }
  0x3f   : > { %1625 = vmatmul.msk.f32.vlgmr.msra.gmra.mxu1 %vm468_vm0, %v2044_v48  ;;  %1629 = vmatmul.msk.f32.vlgmr.msra.gmra.mxu2 %vm468_vm0, %v2044_v48  ;;  %p1825_p12 = pnand %p1824_p6, %p1977_p10  ;;  %p1830_p3 = por %p1829_p2, %p1828_p1 }
  0x40   : > { %1633 = vmatmul.msk.f32.vlgmr.msra.gmra.mxu3 %vm468_vm0, %v2044_v48  ;;  %460 = vperm.xlu0 %1774, %v446_v51  }
  0x41   : > { %606 = vmatpush.msrb.mxu0 %v436_v50  ;;  %635 = vmatpush.msrb.mxu1 %v437_v52  ;;  %p1826_p13 = pneg %p1825_p12 }
  0x42   : > { %664 = vmatpush.msrb.mxu2 %v438_v53  ;;  %693 = vmatpush.msrb.mxu3 %v439_v55 }
  0x43   : > { %607 = vmatpush.msrb.mxu0 %v428_v56  ;;  %636 = vmatpush.msrb.mxu1 %v429_v58  ;;  %p1831_p4 = pnand %p1830_p3, %p1826_p13 }
  0x44   : > { %450 = vperm.xlu1 %1775, %v444_v59   ;;  %665 = vmatpush.msrb.mxu2 %v430_v60 }
  0x45   : > { %694 = vmatpush.msrb.mxu3 %v431_v61  ;;  %608 = vmatpush.msrb.mxu0 %v420_v62 }
  0x46   : > { %637 = vmatpush.msrb.mxu1 %v421_v63  ;;  %1622 = vmatmul.msk.f32.gmra.mxu0 %vm468_vm0, %v2068_v2 }
  0x47   : > { %1626 = vmatmul.msk.f32.gmra.mxu1 %vm468_vm0, %v2068_v2  ;;  %1630 = vmatmul.msk.f32.gmra.mxu2 %vm468_vm0, %v2068_v2 }
  0x48   : > { %1634 = vmatmul.msk.f32.gmra.mxu3 %vm468_vm0, %v2068_v2  ;;  %760 = vperm.xlu0 %1774, %v750_v5  }
  0x49   : > { %666 = vmatpush.msrb.mxu2 %v422_v4  ;;  %695 = vmatpush.msrb.mxu3 %v423_v6 }
  0x4a   : > { %609 = vmatpush.msrb.mxu0 %v412_v7  ;;  %638 = vmatpush.msrb.mxu1 %v413_v9 }
  0x4b   : > { %667 = vmatpush.msrb.mxu2 %v414_v10  ;;  %696 = vmatpush.msrb.mxu3 %v415_v12 }
  0x4c   : > { %755 = vperm.xlu1 %1775, %v749_v13   ;;  %610 = vmatpush.msrb.mxu0 %v404_v14 }
  0x4d   : > { %639 = vmatpush.msrb.mxu1 %v405_v15  ;;  %668 = vmatpush.msrb.mxu2 %v406_v16 }
  0x4e   : > { %697 = vmatpush.msrb.mxu3 %v407_v17  ;;  %1623 = vmatmul.msk.f32.gmra.mxu0 %vm468_vm0, %v442_v20 }
  0x4f   : > { %1627 = vmatmul.msk.f32.gmra.mxu1 %vm468_vm0, %v442_v20  ;;  %1631 = vmatmul.msk.f32.gmra.mxu2 %vm468_vm0, %v442_v20 }
  0x50   : > { %1635 = vmatmul.msk.f32.gmra.mxu3 %vm468_vm0, %v442_v20  ;;  %1065 = vperm.xlu0 %1774, %v1055_v23  }
  0x51   : > { %611 = vmatpush.msrb.mxu0 %v396_v22  ;;  %640 = vmatpush.msrb.mxu1 %v397_v24 }
  0x52   : > { %669 = vmatpush.msrb.mxu2 %v398_v25  ;;  %698 = vmatpush.msrb.mxu3 %v399_v27 }
  0x53   : > { %612 = vmatpush.msrb.mxu0 %v388_v28  ;;  %641 = vmatpush.msrb.mxu1 %v389_v29  ;;  %v752_v29 = vld [vmem:[%s2569_s4 + $0x18] sm:$0xff] }
  0x54   : > { %1070 = vperm.xlu1 %1775, %v1056_v30   ;;  %670 = vmatpush.msrb.mxu2 %v390_v31 }
  0x55   : > { %699 = vmatpush.msrb.mxu3 %v391_v32  ;;  %770 = vperm.xlu2 %1776, %v752_v29  }
  0x56   : > { %1624 = vmatmul.msk.f32.gmra.mxu0 %vm468_vm0, %v443_v33 }
  0x57   : > { %1628 = vmatmul.msk.f32.gmra.mxu1 %vm468_vm0, %v443_v33  ;;  %1632 = vmatmul.msk.f32.gmra.mxu2 %vm468_vm0, %v443_v33 }
  0x58   : > { %1636 = vmatmul.msk.f32.gmra.mxu3 %vm468_vm0, %v443_v33  ;;  %1360 = vperm.xlu0 %1774, %v1354_v34   ;;  %v2191_v34 = vld [vmem:[%s2568_s3 + $0x8] sm:$0xff] }
  0x5c   : > { %1365 = vperm.xlu1 %1775, %v1355_v35  }
  0x5e   : > { %1637 = vmatmul.msk.f32.vlgmr.msrb.gmra.mxu0 %vm468_vm0, %v2044_v48 }
  0x5f   : > { %1641 = vmatmul.msk.f32.vlgmr.msrb.gmra.mxu1 %vm468_vm0, %v2044_v48  ;;  %1645 = vmatmul.msk.f32.vlgmr.msrb.gmra.mxu2 %vm468_vm0, %v2044_v48 }
  0x60   : > { %1649 = vmatmul.msk.f32.vlgmr.msrb.gmra.mxu3 %vm468_vm0, %v2044_v48  ;;  %1375 = vperm.xlu0 %1774, %v1357_v36  }
  0x64   : > { %1485 = vperm.xlu1 %1775, %v1482_v37   ;;  %v751_v37 = vld [vmem:[%s2569_s4 + $0x10] sm:$0xff] }
  0x65   : > { %765 = vperm.xlu2 %1776, %v751_v37  }
  0x66   : > { %1638 = vmatmul.msk.f32.gmra.mxu0 %vm468_vm0, %v2068_v2 }
  0x67   : > { %1642 = vmatmul.msk.f32.gmra.mxu1 %vm468_vm0, %v2068_v2  ;;  %1646 = vmatmul.msk.f32.gmra.mxu2 %vm468_vm0, %v2068_v2 }
  0x68   : > { %1650 = vmatmul.msk.f32.gmra.mxu3 %vm468_vm0, %v2068_v2 }
  0x6e   : > { %1639 = vmatmul.msk.f32.gmra.mxu0 %vm468_vm0, %v442_v20 }
  0x6f   : > { %1643 = vmatmul.msk.f32.gmra.mxu1 %vm468_vm0, %v442_v20  ;;  %1647 = vmatmul.msk.f32.gmra.mxu2 %vm468_vm0, %v442_v20 }
  0x70   : > { %1651 = vmatmul.msk.f32.gmra.mxu3 %vm468_vm0, %v442_v20 }
  0x76   : > { %1640 = vmatmul.msk.f32.gmra.mxu0 %vm468_vm0, %v443_v33 }
  0x77   : > { %1644 = vmatmul.msk.f32.gmra.mxu1 %vm468_vm0, %v443_v33  ;;  %1648 = vmatmul.msk.f32.gmra.mxu2 %vm468_vm0, %v443_v33 }
  0x78   : > { %1652 = vmatmul.msk.f32.gmra.mxu3 %vm468_vm0, %v443_v33 }
  0xa1   : > { %v2144_v44 = vpop.permute.xlu0 %465 }
  0xae   : > { %v2146_v49 = vpop.permute.xlu1 %455 }
  0xb2   : > { %v2148_v52 = vpop.permute.xlu0 %460 }
  0xb6   : > { %v2155_v61 = vpop.permute.xlu1 %450 }
  0xbb   : > { %v498_v38 = vpop.f32.mrf.mxu0 }
  0xbc   : > { %v527_v39 = vpop.f32.mrf.mxu1  ;;  %v499_v0 = vadd.f32 %v498_v38, %v2155_v61 }
  0xbd   : > { %v528_v1 = vadd.f32 %v527_v39, %v2155_v61 }
  0xbe   : > { %v713_v12 = vmax.f32 %v499_v0, 0.0 }
  0xbf   : > { %v714_v13 = vmax.f32 %v528_v1, 0.0  ;;  %v1057_v1 = vld [vmem:[%s2571_s6 + $0x18] sm:$0xff] }
  0xc2   : > { %v556_v40 = vpop.f32.mrf.mxu2 }
  0xc3   : > { %v585_v41 = vpop.f32.mrf.mxu3  ;;  %v501_v42 = vpop.f32.mrf.mxu0  ;;  %v557_v21 = vadd.f32 %v556_v40, %v2155_v61  ;;  %v2207_v40 = vld [vmem:[%s2568_s3 + $0x10] sm:$0xff] }
  0xc4   : > { %v530_v43 = vpop.f32.mrf.mxu1  ;;  %v502_v59 = vadd.f32 %v501_v42, %v2146_v49  ;;  %v586_v23 = vadd.f32 %v585_v41, %v2155_v61 }
  0xc5   : > { %v531_v62 = vadd.f32 %v530_v43, %v2146_v49  ;;  %v715_v30 = vmax.f32 %v557_v21, 0.0  ;;  %v1054_v43 = vld [vmem:[%s2571_s6] sm:$0xff] }
  0xc6   : > { %v721_v4 = vmax.f32 %v502_v59, 0.0  ;;  %v716_v32 = vmax.f32 %v586_v23, 0.0  ;;  %1060 = vperm.xlu2 %1776, %v1054_v43   ;;  %v2295_v23 = vpop.permute.xlu2 %770 }
  0xc7   : > { %v722_v7 = vmax.f32 %v531_v62, 0.0 }
  0xca   : > { %v559_v45 = vpop.f32.mrf.mxu2 }
  0xcb   : > { %v588_v46 = vpop.f32.mrf.mxu3  ;;  %v504_v47 = vpop.f32.mrf.mxu0  ;;  %v560_v16 = vadd.f32 %v559_v45, %v2146_v49 }
  0xcc   : > { %v533_v48 = vpop.f32.mrf.mxu1  ;;  %v505_v54 = vadd.f32 %v504_v47, %v2148_v52  ;;  %v589_v20 = vadd.f32 %v588_v46, %v2146_v49 }
  0xcd   : > { %v534_v57 = vadd.f32 %v533_v48, %v2148_v52  ;;  %v723_v25 = vmax.f32 %v560_v16, 0.0 }
  0xce   : > { %v729_v2 = vmax.f32 %v505_v54, 0.0  ;;  %v724_v26 = vmax.f32 %v589_v20, 0.0  ;;  %1075 = vperm.xlu2 %1776, %v1057_v1  }
  0xcf   : > { %v730_v3 = vmax.f32 %v534_v57, 0.0 }
  0xd2   : > { %v562_v50 = vpop.f32.mrf.mxu2 }
  0xd3   : > { %v591_v51 = vpop.f32.mrf.mxu3  ;;  %v507_v53 = vpop.f32.mrf.mxu0  ;;  %v563_v8 = vadd.f32 %v562_v50, %v2148_v52 }
  0xd4   : > { %v508_v55 = vadd.f32 %v507_v53, %v2144_v44  ;;  %v536_v56 = vpop.f32.mrf.mxu1  ;;  %v592_v14 = vadd.f32 %v591_v51, %v2148_v52  ;;  %v2226_v51 = vld [vmem:[%s2568_s3 + $0x18] sm:$0xff] }
  0xd5   : > { %v537_v58 = vadd.f32 %v536_v56, %v2144_v44  ;;  %v731_v22 = vmax.f32 %v563_v8, 0.0 }
  0xd6   : > { %v737_v60 = vmax.f32 %v508_v55, 0.0  ;;  %v732_v24 = vmax.f32 %v592_v14, 0.0  ;;  %v1356_v14 = vld [vmem:[%s2572_s7 + $0x10] sm:$0xff] }
  0xd7   : > { %v738_v63 = vmax.f32 %v537_v58, 0.0  ;;  %1370 = vperm.xlu2 %1776, %v1356_v14  }
  0xd8   : > { %798 = vmatpush.msra.mxu0 %v737_v60 }
  0xd9   : > { %827 = vmatpush.msra.mxu1 %v738_v63 }
  0xda   : > { %v565_v5 = vpop.f32.mrf.mxu2  ;;  %799 = vmatpush.msra.mxu0 %v729_v2 }
  0xdb   : > { %v594_v6 = vpop.f32.mrf.mxu3  ;;  %v566_v9 = vadd.f32 %v565_v5, %v2144_v44  ;;  %828 = vmatpush.msra.mxu1 %v730_v3  ;;  %v2163_v11 = vpop.f32.mrf.mxu0 }
  0xdc   : > { %v595_v10 = vadd.f32 %v594_v6, %v2144_v44  ;;  %v2166_v15 = vpop.f32.mrf.mxu1  ;;  %800 = vmatpush.msra.mxu0 %v721_v4  ;;  %v615_v58 = vadd.f32 %v2163_v11, %v2155_v61 }
  0xdd   : > { %v739_v17 = vmax.f32 %v566_v9, 0.0  ;;  %829 = vmatpush.msra.mxu1 %v722_v7  ;;  %v644_v60 = vadd.f32 %v2166_v15, %v2155_v61 }
  0xde   : > { %v740_v18 = vmax.f32 %v595_v10, 0.0  ;;  %801 = vmatpush.msra.mxu0 %v713_v12  ;;  %v717_v7 = vmax.f32 %v615_v58, 0.0 }
  0xdf   : > { %830 = vmatpush.msra.mxu1 %v714_v13  ;;  %856 = vmatpush.msra.mxu2 %v739_v17  ;;  %v718_v11 = vmax.f32 %v644_v60, 0.0 }
  0xe0   : > { %885 = vmatpush.msra.mxu3 %v740_v18  ;;  %1653 = vmatmul.msk.f32.vlgmr.msra.gmra.mxu0 %vm773_vm1, %v2172_v19 }
  0xe1   : > { %1657 = vmatmul.msk.f32.vlgmr.msra.gmra.mxu1 %vm773_vm1, %v2172_v19  ;;  %857 = vmatpush.msra.mxu2 %v731_v22 }
  0xe2   : > { %886 = vmatpush.msra.mxu3 %v732_v24  ;;  %v2181_v27 = vpop.f32.mrf.mxu2 }
  0xe3   : > { %v2183_v28 = vpop.f32.mrf.mxu3  ;;  %858 = vmatpush.msra.mxu2 %v723_v25  ;;  %v617_v31 = vpop.f32.mrf.mxu0  ;;  %v673_v13 = vadd.f32 %v2181_v27, %v2155_v61 }
  0xe4   : > { %887 = vmatpush.msra.mxu3 %v724_v26  ;;  %v646_v33 = vpop.f32.mrf.mxu1  ;;  %v618_v55 = vadd.f32 %v617_v31, %v2146_v49  ;;  %v702_v15 = vadd.f32 %v2183_v28, %v2155_v61 }
  0xe5   : > { %859 = vmatpush.msra.mxu2 %v715_v30  ;;  %v647_v57 = vadd.f32 %v646_v33, %v2146_v49  ;;  %v719_v18 = vmax.f32 %v673_v13, 0.0  ;;  %v2297_v30 = vpop.permute.xlu2 %765 }
  0xe6   : > { %888 = vmatpush.msra.mxu3 %v716_v32  ;;  %1661 = vmatmul.msk.f32.vlgmr.msra.gmra.mxu2 %vm773_vm1, %v2172_v19  ;;  %v725_v2 = vmax.f32 %v618_v55, 0.0  ;;  %v720_v20 = vmax.f32 %v702_v15, 0.0 }
  0xe7   : > { %1665 = vmatmul.msk.f32.vlgmr.msra.gmra.mxu3 %vm773_vm1, %v2172_v19  ;;  %v726_v5 = vmax.f32 %v647_v57, 0.0 }
  0xe8   : > { %1654 = vmatmul.msk.f32.gmra.mxu0 %vm773_vm1, %v2191_v34 }
  0xe9   : > { %1658 = vmatmul.msk.f32.gmra.mxu1 %vm773_vm1, %v2191_v34 }
  0xea   : > { %v675_v35 = vpop.f32.mrf.mxu2 }
  0xeb   : > { %v704_v36 = vpop.f32.mrf.mxu3  ;;  %v620_v38 = vpop.f32.mrf.mxu0  ;;  %v676_v12 = vadd.f32 %v675_v35, %v2146_v49 }
  0xec   : > { %v649_v39 = vpop.f32.mrf.mxu1  ;;  %v621_v48 = vadd.f32 %v620_v38, %v2148_v52 }
  0xed   : > { %v650_v53 = vadd.f32 %v649_v39, %v2148_v52 }
  0xee   : > { %1662 = vmatmul.msk.f32.gmra.mxu2 %vm773_vm1, %v2191_v34  ;;  %v733_v59 = vmax.f32 %v621_v48, 0.0 }
  0xef   : > { %1666 = vmatmul.msk.f32.gmra.mxu3 %vm773_vm1, %v2191_v34  ;;  %v734_v62 = vmax.f32 %v650_v53, 0.0 }
  0xf0   : > { %1655 = vmatmul.msk.f32.gmra.mxu0 %vm773_vm1, %v2207_v40 }
  0xf1   : > { %1659 = vmatmul.msk.f32.gmra.mxu1 %vm773_vm1, %v2207_v40 }
  0xf2   : > { %v678_v41 = vpop.f32.mrf.mxu2 }
  0xf3   : > { %v707_v42 = vpop.f32.mrf.mxu3  ;;  %v623_v45 = vpop.f32.mrf.mxu0  ;;  %v679_v6 = vadd.f32 %v678_v41, %v2148_v52 }
  0xf4   : > { %v624_v46 = vadd.f32 %v623_v45, %v2144_v44  ;;  %v652_v47 = vpop.f32.mrf.mxu1  ;;  %v708_v8 = vadd.f32 %v707_v42, %v2148_v52  ;;  %v2306_v41 = vpop.permute.xlu1 %755 }
  0xf5   : > { %v653_v50 = vadd.f32 %v652_v47, %v2144_v44  ;;  %v735_v52 = vmax.f32 %v679_v6, 0.0 }
  0xf6   : > { %v741_v54 = vmax.f32 %v624_v46, 0.0  ;;  %1663 = vmatmul.msk.f32.gmra.mxu2 %vm773_vm1, %v2207_v40  ;;  %v736_v16 = vmax.f32 %v708_v8, 0.0 }
  0xf7   : > { %v742_v56 = vmax.f32 %v653_v50, 0.0  ;;  %1667 = vmatmul.msk.f32.gmra.mxu3 %vm773_vm1, %v2207_v40 }
  0xf8   : > { %1656 = vmatmul.msk.f32.gmra.mxu0 %vm773_vm1, %v2226_v51 }
  0xf9   : > { %1660 = vmatmul.msk.f32.gmra.mxu1 %vm773_vm1, %v2226_v51  ;;  %914 = vmatpush.msrb.mxu0 %v741_v54 }
  0xfa   : > { %943 = vmatpush.msrb.mxu1 %v742_v56  ;;  %v681_v63 = vpop.f32.mrf.mxu2  ;;  %v2316_v56 = vld [vmem:[%s2570_s5] sm:$0xff] }
  0xfb   : > { %v710_v0 = vpop.f32.mrf.mxu3  ;;  %v682_v3 = vadd.f32 %v681_v63, %v2144_v44  ;;  %915 = vmatpush.msrb.mxu0 %v733_v59 }
  0xfc   : > { %v711_v4 = vadd.f32 %v710_v0, %v2144_v44  ;;  %944 = vmatpush.msrb.mxu1 %v734_v62  ;;  %v705_v44 = vadd.f32 %v704_v36, %v2146_v49  ;;  %v727_v49 = vmax.f32 %v676_v12, 0.0  ;;  %v2302_v36 = vpop.permute.xlu0 %760 }
  0xfd   : > { %v743_v9 = vmax.f32 %v682_v3, 0.0  ;;  %916 = vmatpush.msrb.mxu0 %v725_v2 }
  0xfe   : > { %v744_v10 = vmax.f32 %v711_v4, 0.0  ;;  %945 = vmatpush.msrb.mxu1 %v726_v5  ;;  %1664 = vmatmul.msk.f32.gmra.mxu2 %vm773_vm1, %v2226_v51  ;;  %v728_v17 = vmax.f32 %v705_v44, 0.0 }
  0xff   : > { %1668 = vmatmul.msk.f32.gmra.mxu3 %vm773_vm1, %v2226_v51  ;;  %917 = vmatpush.msrb.mxu0 %v717_v7 }
 0x100   : > { %946 = vmatpush.msrb.mxu1 %v718_v11  ;;  %972 = vmatpush.msrb.mxu2 %v743_v9  ;;  %v2334_v9 = vld [vmem:[%s2570_s5 + $0x8] sm:$0xff] }
 0x101   : > { %1001 = vmatpush.msrb.mxu3 %v744_v10  ;;  %1669 = vmatmul.msk.f32.vlgmr.msrb.gmra.mxu0 %vm773_vm1, %v2172_v19 }
 0x102   : > { %1673 = vmatmul.msk.f32.vlgmr.msrb.gmra.mxu1 %vm773_vm1, %v2172_v19  ;;  %973 = vmatpush.msrb.mxu2 %v735_v52 }
 0x103   : > { %1002 = vmatpush.msrb.mxu3 %v736_v16 }
 0x104   : > { %974 = vmatpush.msrb.mxu2 %v727_v49 }
 0x105   : > { %1003 = vmatpush.msrb.mxu3 %v728_v17  ;;  %v2352_v17 = vld [vmem:[%s2570_s5 + $0x10] sm:$0xff] }
 0x106   : > { %975 = vmatpush.msrb.mxu2 %v719_v18 }
 0x107   : > { %1004 = vmatpush.msrb.mxu3 %v720_v20  ;;  %1677 = vmatmul.msk.f32.vlgmr.msrb.gmra.mxu2 %vm773_vm1, %v2172_v19 }
 0x108   : > { %1681 = vmatmul.msk.f32.vlgmr.msrb.gmra.mxu3 %vm773_vm1, %v2172_v19 }
 0x109   : > { %1670 = vmatmul.msk.f32.gmra.mxu0 %vm773_vm1, %v2191_v34 }
 0x10a   : > { %1674 = vmatmul.msk.f32.gmra.mxu1 %vm773_vm1, %v2191_v34 }
 0x10f   : > { %1678 = vmatmul.msk.f32.gmra.mxu2 %vm773_vm1, %v2191_v34 }
 0x110   : > { %1682 = vmatmul.msk.f32.gmra.mxu3 %vm773_vm1, %v2191_v34 }
 0x111   : > { %1671 = vmatmul.msk.f32.gmra.mxu0 %vm773_vm1, %v2207_v40 }
 0x112   : > { %1675 = vmatmul.msk.f32.gmra.mxu1 %vm773_vm1, %v2207_v40 }
 0x117   : > { %1679 = vmatmul.msk.f32.gmra.mxu2 %vm773_vm1, %v2207_v40 }
 0x118   : > { %1683 = vmatmul.msk.f32.gmra.mxu3 %vm773_vm1, %v2207_v40 }
 0x119   : > { %1672 = vmatmul.msk.f32.gmra.mxu0 %vm773_vm1, %v2226_v51 }
 0x11a   : > { %1676 = vmatmul.msk.f32.gmra.mxu1 %vm773_vm1, %v2226_v51 }
 0x11f   : > { %1680 = vmatmul.msk.f32.gmra.mxu2 %vm773_vm1, %v2226_v51 }
 0x120   : > { %1684 = vmatmul.msk.f32.gmra.mxu3 %vm773_vm1, %v2226_v51 }
 0x15d   : > { %v803_v61 = vpop.f32.mrf.mxu0 }
 0x15e   : > { %v832_v19 = vpop.f32.mrf.mxu1  ;;  %v804_v47 = vadd.f32 %v803_v61, %v2306_v41 }
 0x15f   : > { %v833_v50 = vadd.f32 %v832_v19, %v2306_v41 }
 0x160   : > { %v1018_v54 = vmax.f32 %v804_v47, 0.0 }
 0x161   : > { %v1019_v57 = vmax.f32 %v833_v50, 0.0 }
 0x165   : > { %v806_v21 = vpop.f32.mrf.mxu0 }
 0x166   : > { %v835_v22 = vpop.f32.mrf.mxu1  ;;  %v807_v38 = vadd.f32 %v806_v21, %v2302_v36  ;;  %v2365_v21 = vld [vmem:[%s2570_s5 + $0x18] sm:$0xff] }
 0x167   : > { %v836_v42 = vadd.f32 %v835_v22, %v2302_v36 }
 0x168   : > { %v1026_v51 = vmax.f32 %v807_v38, 0.0 }
 0x169   : > { %v861_v24 = vpop.f32.mrf.mxu2  ;;  %v1027_v53 = vmax.f32 %v836_v42, 0.0 }
 0x16a   : > { %v890_v25 = vpop.f32.mrf.mxu3  ;;  %v862_v6 = vadd.f32 %v861_v24, %v2306_v41 }
 0x16b   : > { %v891_v10 = vadd.f32 %v890_v25, %v2306_v41 }
 0x16c   : > { %v1020_v52 = vmax.f32 %v862_v6, 0.0 }
 0x16d   : > { %v809_v26 = vpop.f32.mrf.mxu0  ;;  %v1021_v15 = vmax.f32 %v891_v10, 0.0 }
 0x16e   : > { %v838_v27 = vpop.f32.mrf.mxu1  ;;  %v810_v31 = vadd.f32 %v809_v26, %v2297_v30 }
 0x16f   : > { %v839_v32 = vadd.f32 %v838_v27, %v2297_v30 }
 0x170   : > { %v1034_v39 = vmax.f32 %v810_v31, 0.0 }
 0x171   : > { %v864_v28 = vpop.f32.mrf.mxu2  ;;  %v1035_v43 = vmax.f32 %v839_v32, 0.0 }
 0x172   : > { %v893_v29 = vpop.f32.mrf.mxu3  ;;  %v865_v2 = vadd.f32 %v864_v28, %v2302_v36 }
 0x173   : > { %v894_v4 = vadd.f32 %v893_v29, %v2302_v36 }
 0x174   : > { %v1028_v44 = vmax.f32 %v865_v2, 0.0 }
 0x175   : > { %v812_v33 = vpop.f32.mrf.mxu0  ;;  %v1029_v13 = vmax.f32 %v894_v4, 0.0 }
 0x176   : > { %v813_v34 = vadd.f32 %v812_v33, %v2295_v23  ;;  %v841_v35 = vpop.f32.mrf.mxu1 }
 0x177   : > { %v842_v37 = vadd.f32 %v841_v35, %v2295_v23 }
 0x178   : > { %v1042_v40 = vmax.f32 %v813_v34, 0.0 }
 0x179   : > { %v1043_v45 = vmax.f32 %v842_v37, 0.0  ;;  %v867_v46 = vpop.f32.mrf.mxu2 }
 0x17a   : > { %v896_v48 = vpop.f32.mrf.mxu3  ;;  %1102 = vmatpush.msra.mxu0 %v1042_v40  ;;  %v868_v60 = vadd.f32 %v867_v46, %v2297_v30 }
 0x17b   : > { %1131 = vmatpush.msra.mxu1 %v1043_v45  ;;  %v897_v0 = vadd.f32 %v896_v48, %v2297_v30 }
 0x17c   : > { %1103 = vmatpush.msra.mxu0 %v1034_v39  ;;  %v1036_v7 = vmax.f32 %v868_v60, 0.0 }
 0x17d   : > { %1132 = vmatpush.msra.mxu1 %v1035_v43  ;;  %v1037_v11 = vmax.f32 %v897_v0, 0.0 }
 0x17e   : > { %v2311_v55 = vpop.f32.mrf.mxu0  ;;  %1104 = vmatpush.msra.mxu0 %v1026_v51 }
 0x17f   : > { %v2318_v58 = vpop.f32.mrf.mxu1  ;;  %1133 = vmatpush.msra.mxu1 %v1027_v53  ;;  %v920_v34 = vadd.f32 %v2311_v55, %v2306_v41 }
 0x180   : > { %1105 = vmatpush.msra.mxu0 %v1018_v54  ;;  %v949_v38 = vadd.f32 %v2318_v58, %v2306_v41 }
 0x181   : > { %1134 = vmatpush.msra.mxu1 %v1019_v57  ;;  %v870_v59 = vpop.f32.mrf.mxu2  ;;  %1685 = vmatmul.msk.f32.vlgmr.msra.gmra.mxu0 %vm773_vm1, %v2316_v56  ;;  %v1022_v43 = vmax.f32 %v920_v34, 0.0 }
 0x182   : > { %v871_v62 = vadd.f32 %v870_v59, %v2295_v23  ;;  %v899_v63 = vpop.f32.mrf.mxu3  ;;  %1689 = vmatmul.msk.f32.vlgmr.msra.gmra.mxu1 %vm773_vm1, %v2316_v56  ;;  %v1023_v45 = vmax.f32 %v949_v38, 0.0 }
 0x183   : > { %v900_v1 = vadd.f32 %v899_v63, %v2295_v23 }
 0x184   : > { %v1044_v3 = vmax.f32 %v871_v62, 0.0 }
 0x185   : > { %v1045_v5 = vmax.f32 %v900_v1, 0.0 }
 0x186   : > { %v922_v8 = vpop.f32.mrf.mxu0  ;;  %1160 = vmatpush.msra.mxu2 %v1044_v3 }
 0x187   : > { %v951_v12 = vpop.f32.mrf.mxu1  ;;  %1189 = vmatpush.msra.mxu3 %v1045_v5  ;;  %v923_v28 = vadd.f32 %v922_v8, %v2302_v36 }
 0x188   : > { %1161 = vmatpush.msra.mxu2 %v1036_v7  ;;  %v952_v31 = vadd.f32 %v951_v12, %v2302_v36  ;;  %v2435_v12 = vpop.permute.xlu2 %1060 }
 0x189   : > { %1190 = vmatpush.msra.mxu3 %v1037_v11  ;;  %1686 = vmatmul.msk.f32.gmra.mxu0 %vm773_vm1, %v2334_v9  ;;  %v1030_v40 = vmax.f32 %v923_v28, 0.0  ;;  %v2433_v11 = vpop.permute.xlu1 %1070 }
 0x18a   : > { %v2339_v14 = vpop.f32.mrf.mxu2  ;;  %1690 = vmatmul.msk.f32.gmra.mxu1 %vm773_vm1, %v2334_v9  ;;  %1162 = vmatpush.msra.mxu2 %v1028_v44  ;;  %v1031_v42 = vmax.f32 %v952_v31, 0.0  ;;  %v2437_v44 = vpop.permute.xlu0 %1065 }
 0x18b   : > { %v2343_v16 = vpop.f32.mrf.mxu3  ;;  %1191 = vmatpush.msra.mxu3 %v1029_v13  ;;  %v978_v59 = vadd.f32 %v2339_v14, %v2306_v41 }
 0x18c   : > { %1163 = vmatpush.msra.mxu2 %v1020_v52 }
 0x18d   : > { %1192 = vmatpush.msra.mxu3 %v1021_v15  ;;  %1693 = vmatmul.msk.f32.vlgmr.msra.gmra.mxu2 %vm773_vm1, %v2316_v56 }
 0x18e   : > { %v925_v49 = vpop.f32.mrf.mxu0  ;;  %1697 = vmatmul.msk.f32.vlgmr.msra.gmra.mxu3 %vm773_vm1, %v2316_v56 }
 0x18f   : > { %v954_v18 = vpop.f32.mrf.mxu1  ;;  %v926_v22 = vadd.f32 %v925_v49, %v2297_v30 }
 0x190   : > { %v955_v26 = vadd.f32 %v954_v18, %v2297_v30 }
 0x191   : > { %1687 = vmatmul.msk.f32.gmra.mxu0 %vm773_vm1, %v2352_v17  ;;  %v1038_v35 = vmax.f32 %v926_v22, 0.0 }
 0x192   : > { %v980_v20 = vpop.f32.mrf.mxu2  ;;  %1691 = vmatmul.msk.f32.gmra.mxu1 %vm773_vm1, %v2352_v17  ;;  %v1039_v39 = vmax.f32 %v955_v26, 0.0 }
 0x193   : > { %v1009_v61 = vpop.f32.mrf.mxu3  ;;  %v981_v54 = vadd.f32 %v980_v20, %v2302_v36  ;;  %v2442_v20 = vpop.permute.xlu1 %1365 }
 0x194   : > { %v1010_v57 = vadd.f32 %v1009_v61, %v2302_v36  ;;  %v1024_v36 = vmax.f32 %v978_v59, 0.0  ;;  %v2444_v61 = vpop.permute.xlu2 %1075 }
 0x195   : > { %1694 = vmatmul.msk.f32.gmra.mxu2 %vm773_vm1, %v2334_v9  ;;  %v1032_v62 = vmax.f32 %v981_v54, 0.0 }
 0x196   : > { %v928_v19 = vpop.f32.mrf.mxu0  ;;  %1698 = vmatmul.msk.f32.gmra.mxu3 %vm773_vm1, %v2334_v9  ;;  %v1033_v63 = vmax.f32 %v1010_v57, 0.0 }
 0x197   : > { %v929_v24 = vadd.f32 %v928_v19, %v2295_v23  ;;  %v957_v25 = vpop.f32.mrf.mxu1 }
 0x198   : > { %v958_v27 = vadd.f32 %v957_v25, %v2295_v23 }
 0x199   : > { %v1046_v29 = vmax.f32 %v929_v24, 0.0  ;;  %1688 = vmatmul.msk.f32.gmra.mxu0 %vm773_vm1, %v2365_v21 }
 0x19a   : > { %v1047_v32 = vmax.f32 %v958_v27, 0.0  ;;  %v983_v33 = vpop.f32.mrf.mxu2  ;;  %1692 = vmatmul.msk.f32.gmra.mxu1 %vm773_vm1, %v2365_v21 }
 0x19b   : > { %v1012_v37 = vpop.f32.mrf.mxu3  ;;  %1218 = vmatpush.msrb.mxu0 %v1046_v29  ;;  %v984_v47 = vadd.f32 %v983_v33, %v2297_v30  ;;  %v2450_v29 = vpop.permute.xlu0 %1360 }
 0x19c   : > { %1247 = vmatpush.msrb.mxu1 %v1047_v32  ;;  %v1013_v51 = vadd.f32 %v1012_v37, %v2297_v30 }
 0x19d   : > { %1219 = vmatpush.msrb.mxu0 %v1038_v35  ;;  %1695 = vmatmul.msk.f32.gmra.mxu2 %vm773_vm1, %v2352_v17  ;;  %v1040_v60 = vmax.f32 %v984_v47, 0.0 }
 0x19e   : > { %1248 = vmatpush.msrb.mxu1 %v1039_v39  ;;  %1699 = vmatmul.msk.f32.gmra.mxu3 %vm773_vm1, %v2352_v17  ;;  %v1041_v30 = vmax.f32 %v1013_v51, 0.0 }
 0x19f   : > { %1220 = vmatpush.msrb.mxu0 %v1030_v40 }
 0x1a0   : > { %1249 = vmatpush.msrb.mxu1 %v1031_v42 }
 0x1a1   : > { %1221 = vmatpush.msrb.mxu0 %v1022_v43 }
 0x1a2   : > { %1250 = vmatpush.msrb.mxu1 %v1023_v45  ;;  %v986_v46 = vpop.f32.mrf.mxu2  ;;  %1701 = vmatmul.msk.f32.vlgmr.msrb.gmra.mxu0 %vm773_vm1, %v2316_v56 }
 0x1a3   : > { %v987_v48 = vadd.f32 %v986_v46, %v2295_v23  ;;  %v1015_v50 = vpop.f32.mrf.mxu3  ;;  %1705 = vmatmul.msk.f32.vlgmr.msrb.gmra.mxu1 %vm773_vm1, %v2316_v56 }
 0x1a4   : > { %v1016_v53 = vadd.f32 %v1015_v50, %v2295_v23  ;;  %v1007_v23 = vadd.f32 %v2343_v16, %v2306_v41 }
 0x1a5   : > { %v1048_v55 = vmax.f32 %v987_v48, 0.0  ;;  %1696 = vmatmul.msk.f32.gmra.mxu2 %vm773_vm1, %v2365_v21 }
 0x1a6   : > { %v1049_v58 = vmax.f32 %v1016_v53, 0.0  ;;  %1700 = vmatmul.msk.f32.gmra.mxu3 %vm773_vm1, %v2365_v21  ;;  %v1025_v0 = vmax.f32 %v1007_v23, 0.0  ;;  %v2473_v23 = vpop.permute.xlu2 %1370 }
 0x1a7   : > { %1276 = vmatpush.msrb.mxu2 %v1048_v55 }
 0x1a8   : > { %1305 = vmatpush.msrb.mxu3 %v1049_v58 }
 0x1a9   : > { %1277 = vmatpush.msrb.mxu2 %v1040_v60 }
 0x1aa   : > { %1306 = vmatpush.msrb.mxu3 %v1041_v30  ;;  %1702 = vmatmul.msk.f32.gmra.mxu0 %vm773_vm1, %v2334_v9 }
 0x1ab   : > { %1706 = vmatmul.msk.f32.gmra.mxu1 %vm773_vm1, %v2334_v9  ;;  %1278 = vmatpush.msrb.mxu2 %v1032_v62 }
 0x1ac   : > { %1307 = vmatpush.msrb.mxu3 %v1033_v63 }
 0x1ad   : > { %1279 = vmatpush.msrb.mxu2 %v1024_v36 }
 0x1ae   : > { %1308 = vmatpush.msrb.mxu3 %v1025_v0  ;;  %1709 = vmatmul.msk.f32.vlgmr.msrb.gmra.mxu2 %vm773_vm1, %v2316_v56 }
 0x1af   : > { %1713 = vmatmul.msk.f32.vlgmr.msrb.gmra.mxu3 %vm773_vm1, %v2316_v56 }
 0x1b2   : > { %1703 = vmatmul.msk.f32.gmra.mxu0 %vm773_vm1, %v2352_v17 }
 0x1b3   : > { %1707 = vmatmul.msk.f32.gmra.mxu1 %vm773_vm1, %v2352_v17 }
 0x1b6   : > { %1710 = vmatmul.msk.f32.gmra.mxu2 %vm773_vm1, %v2334_v9 }
 0x1b7   : > { %1714 = vmatmul.msk.f32.gmra.mxu3 %vm773_vm1, %v2334_v9 }
 0x1ba   : > { %1704 = vmatmul.msk.f32.gmra.mxu0 %vm773_vm1, %v2365_v21 }
 0x1bb   : > { %1708 = vmatmul.msk.f32.gmra.mxu1 %vm773_vm1, %v2365_v21 }
 0x1be   : > { %1711 = vmatmul.msk.f32.gmra.mxu2 %vm773_vm1, %v2352_v17 }
 0x1bf   : > { %1715 = vmatmul.msk.f32.gmra.mxu3 %vm773_vm1, %v2352_v17 }
 0x1c6   : > { %1712 = vmatmul.msk.f32.gmra.mxu2 %vm773_vm1, %v2365_v21 }
 0x1c7   : > { %1716 = vmatmul.msk.f32.gmra.mxu3 %vm773_vm1, %v2365_v21 }
 0x1fe   : > { %v1107_v41 = vpop.f32.mrf.mxu0 }
 0x1ff   : > { %v1136_v56 = vpop.f32.mrf.mxu1  ;;  %v2447_v22 = vadd.f32 %v1107_v41, %v2435_v12 }
 0x200   : > { %v1137_v49 = vadd.f32 %v1136_v56, %v2435_v12 }
 0x201   : > { %v1322_v35 = vmax.f32 %v2447_v22, 0.0 }
 0x202   : > { %v1323_v19 = vmax.f32 %v1137_v49, 0.0 }
 0x204   : > { %v1379_v33 = vmul.f32 %v2450_v29, %v1323_v19 }
 0x206   : > { %v1110_v1 = vpop.f32.mrf.mxu0 }
 0x207   : > { %v1139_v2 = vpop.f32.mrf.mxu1  ;;  %v1111_v17 = vadd.f32 %v1110_v1, %v2437_v44 }
 0x208   : > { %v1140_v15 = vadd.f32 %v1139_v2, %v2437_v44 }
 0x209   : > { %v1330_v26 = vmax.f32 %v1111_v17, 0.0 }
 0x20a   : > { %v1331_v18 = vmax.f32 %v1140_v15, 0.0 }
 0x20b   : > { %v2459_v38 = vmul.f32 %v2442_v20, %v1330_v26 }
 0x20c   : > { %v1387_v27 = vmul.f32 %v2442_v20, %v1331_v18 }
 0x20e   : > { %v1113_v3 = vpop.f32.mrf.mxu0  ;;  %v1419_v39 = vadd.f32 %v1387_v27, %v1379_v33 }
 0x20f   : > { %v1142_v4 = vpop.f32.mrf.mxu1  ;;  %v2462_v40 = vadd.f32 %v1113_v3, %v2433_v11 }
 0x210   : > { %v1165_v5 = vpop.f32.mrf.mxu2  ;;  %v1143_v31 = vadd.f32 %v1142_v4, %v2433_v11 }
 0x211   : > { %v1194_v6 = vpop.f32.mrf.mxu3  ;;  %v1166_v37 = vadd.f32 %v1165_v5, %v2435_v12 }
 0x212   : > { %v1195_v42 = vadd.f32 %v1194_v6, %v2435_v12  ;;  %v1339_v43 = vmax.f32 %v1143_v31, 0.0 }
 0x213   : > { %v1324_v55 = vmax.f32 %v1166_v37, 0.0 }
 0x214   : > { %v1325_v30 = vmax.f32 %v1195_v42, 0.0  ;;  %v1395_v41 = vmul.f32 %v2473_v23, %v1339_v43 }
 0x216   : > { %v2431_v7 = vpop.f32.mrf.mxu0  ;;  %v1381_v15 = vmul.f32 %v2450_v29, %v1325_v30 }
 0x217   : > { %v1145_v8 = vpop.f32.mrf.mxu1  ;;  %v1117_v18 = vadd.f32 %v2431_v7, %v2444_v61 }
 0x218   : > { %v1168_v9 = vpop.f32.mrf.mxu2  ;;  %v1146_v45 = vadd.f32 %v1145_v8, %v2444_v61 }
 0x219   : > { %v1197_v10 = vpop.f32.mrf.mxu3  ;;  %v1169_v32 = vadd.f32 %v1168_v9, %v2437_v44  ;;  %v1380_v9 = vmul.f32 %v2450_v29, %v1324_v55 }
 0x21a   : > { %v1198_v34 = vadd.f32 %v1197_v10, %v2437_v44  ;;  %v1347_v56 = vmax.f32 %v1146_v45, 0.0 }
 0x21b   : > { %v1332_v46 = vmax.f32 %v1169_v32, 0.0 }
 0x21c   : > { %v1333_v48 = vmax.f32 %v1198_v34, 0.0 }
 0x21d   : > { %v1388_v1 = vmul.f32 %v2442_v20, %v1332_v46 }
 0x21e   : > { %v1389_v4 = vmul.f32 %v2442_v20, %v1333_v48  ;;  %v1338_v48 = vmax.f32 %v2462_v40, 0.0 }
 0x21f   : > { %v1223_v13 = vpop.f32.mrf.mxu0 }
 0x220   : > { %v1252_v52 = vpop.f32.mrf.mxu1  ;;  %v1171_v14 = vpop.f32.mrf.mxu2  ;;  %v1224_v57 = vadd.f32 %v1223_v13, %v2435_v12  ;;  %v1394_v40 = vmul.f32 %v2473_v23, %v1338_v48 }
 0x221   : > { %v1200_v16 = vpop.f32.mrf.mxu3  ;;  %v1172_v47 = vadd.f32 %v1171_v14, %v2433_v11  ;;  %v1253_v58 = vadd.f32 %v1252_v52, %v2435_v12  ;;  %v2486_v14 = vpop.permute.xlu0 %1375 }
 0x222   : > { %v1201_v50 = vadd.f32 %v1200_v16, %v2433_v11  ;;  %v1326_v10 = vmax.f32 %v1224_v57, 0.0  ;;  %v1403_v19 = vmul.f32 %v2486_v14, %v1347_v56 }
 0x223   : > { %v1340_v2 = vmax.f32 %v1172_v47, 0.0  ;;  %v1327_v13 = vmax.f32 %v1253_v58, 0.0 }
 0x224   : > { %v1341_v5 = vmax.f32 %v1201_v50, 0.0  ;;  %v1382_v32 = vmul.f32 %v2450_v29, %v1326_v10  ;;  %v1420_v50 = vadd.f32 %v1419_v39, %v1395_v41  ;;  %v1378_v39 = vmul.f32 %v2450_v29, %v1322_v35 }
 0x225   : > { %v1383_v33 = vmul.f32 %v2450_v29, %v1327_v13 }
 0x226   : > { %v1397_v26 = vmul.f32 %v2473_v23, %v1341_v5  ;;  %v1421_v30 = vadd.f32 %v1420_v50, %v1403_v19  ;;  %v1410_v5 = vadd.f32 %v2459_v38, %v1378_v39 }
 0x227   : > { %v1226_v21 = vpop.f32.mrf.mxu0 }
 0x228   : > { %v1255_v24 = vpop.f32.mrf.mxu1  ;;  %v1174_v25 = vpop.f32.mrf.mxu2  ;;  %v1227_v51 = vadd.f32 %v1226_v21, %v2437_v44  ;;  %v1428_v21 = vadd.f32 %v1388_v1, %v1380_v9  ;;  %v1422_v9 = vrot.slane %v1421_v30, 4 }
 0x229   : > { %v1203_v28 = vpop.f32.mrf.mxu3  ;;  %v1256_v53 = vadd.f32 %v1255_v24, %v2437_v44  ;;  %v1175_v59 = vadd.f32 %v1174_v25, %v2444_v61  ;;  %v1396_v24 = vmul.f32 %v2473_v23, %v1340_v2  ;;  %v1437_v25 = vadd.f32 %v1389_v4, %v1381_v15 }
 0x22a   : > { %v1204_v62 = vadd.f32 %v1203_v28, %v2444_v61  ;;  %v1334_v6 = vmax.f32 %v1227_v51, 0.0 }
 0x22b   : > { %v1335_v8 = vmax.f32 %v1256_v53, 0.0  ;;  %v1348_v52 = vmax.f32 %v1175_v59, 0.0  ;;  %v1429_v51 = vadd.f32 %v1428_v21, %v1396_v24  ;;  %v1438_v55 = vadd.f32 %v1437_v25, %v1397_v26 }
 0x22c   : > { %v1349_v16 = vmax.f32 %v1204_v62, 0.0  ;;  %v1390_v27 = vmul.f32 %v2442_v20, %v1334_v6  ;;  %v1423_v25 = vadd.f32 %v1422_v9, %v1421_v30 }
 0x22d   : > { %v1391_v28 = vmul.f32 %v2442_v20, %v1335_v8  ;;  %v1404_v34 = vmul.f32 %v2486_v14, %v1348_v52 }
 0x22e   : > { %v1405_v42 = vmul.f32 %v2486_v14, %v1349_v16  ;;  %v1446_v57 = vadd.f32 %v1390_v27, %v1382_v32  ;;  %v1411_v16 = vadd.f32 %v1410_v5, %v1394_v40 }
 0x22f   : > { %v1229_v54 = vpop.f32.mrf.mxu0  ;;  %v1455_v58 = vadd.f32 %v1391_v28, %v1383_v33  ;;  %v1430_v62 = vadd.f32 %v1429_v51, %v1404_v34 }
 0x230   : > { %v1258_v60 = vpop.f32.mrf.mxu1  ;;  %v1230_v63 = vadd.f32 %v1229_v54, %v2433_v11 }
 0x231   : > { %v1259_v36 = vadd.f32 %v1258_v60, %v2433_v11  ;;  %v2478_v0 = vpop.f32.mrf.mxu2  ;;  %v1346_v60 = vmax.f32 %v1117_v18, 0.0  ;;  %v1431_v10 = vrot.slane %v1430_v62, 4 }
 0x232   : > { %v2482_v3 = vpop.f32.mrf.mxu3  ;;  %v1342_v49 = vmax.f32 %v1230_v63, 0.0  ;;  %v1282_v22 = vadd.f32 %v2478_v0, %v2435_v12 }
 0x233   : > { %v1343_v17 = vmax.f32 %v1259_v36, 0.0  ;;  %v1439_v36 = vadd.f32 %v1438_v55, %v1405_v42  ;;  %v1402_v6 = vmul.f32 %v2486_v14, %v1346_v60  ;;  %v1311_v35 = vadd.f32 %v2482_v3, %v2435_v12 }
 0x234   : > { %v1398_v43 = vmul.f32 %v2473_v23, %v1342_v49  ;;  %v1432_v26 = vadd.f32 %v1431_v10, %v1430_v62  ;;  %v1328_v28 = vmax.f32 %v1282_v22, 0.0 }
 0x235   : > { %v1399_v45 = vmul.f32 %v2473_v23, %v1343_v17  ;;  %v1440_v13 = vrot.slane %v1439_v36, 4  ;;  %v1412_v21 = vadd.f32 %v1411_v16, %v1402_v6  ;;  %v1486_v6 = vpop.permute.xlu1 %1485 }
 0x236   : > { %v1447_v56 = vadd.f32 %v1446_v57, %v1398_v43 }
 0x237   : > { %v1232_v31 = vpop.f32.mrf.mxu0  ;;  %v1456_v1 = vadd.f32 %v1455_v58, %v1399_v45  ;;  %v1413_v12 = vrot.slane %v1412_v21, 4  ;;  %v1384_v45 = vmul.f32 %v2450_v29, %v1328_v28 }
 0x238   : > { %v1233_v7 = vadd.f32 %v1232_v31, %v2444_v61  ;;  %v1261_v37 = vpop.f32.mrf.mxu1  ;;  %v1329_v31 = vmax.f32 %v1311_v35, 0.0 }
 0x239   : > { %v1262_v46 = vadd.f32 %v1261_v37, %v2444_v61  ;;  %v1284_v47 = vpop.f32.mrf.mxu2  ;;  %v1433_v37 = vrot.slane %v1432_v26, 2  ;;  %v1414_v57 = vadd.f32 %v1413_v12, %v1412_v21 }
 0x23a   : > { %v1350_v53 = vmax.f32 %v1233_v7, 0.0  ;;  %v1313_v54 = vpop.f32.mrf.mxu3  ;;  %v1285_v8 = vadd.f32 %v1284_v47, %v2437_v44  ;;  %v1424_v7 = vrot.slane %v1423_v25, 2 }
 0x23b   : > { %v1351_v59 = vmax.f32 %v1262_v46, 0.0  ;;  %v1314_v52 = vadd.f32 %v1313_v54, %v2437_v44  ;;  %v1441_v44 = vadd.f32 %v1440_v13, %v1439_v36  ;;  %v1385_v46 = vmul.f32 %v2450_v29, %v1329_v31 }
 0x23c   : > { %v1406_v63 = vmul.f32 %v2486_v14, %v1350_v53  ;;  %v1336_v24 = vmax.f32 %v1285_v8, 0.0 }
 0x23d   : > { %v1407_v2 = vmul.f32 %v2486_v14, %v1351_v59  ;;  %v1337_v27 = vmax.f32 %v1314_v52, 0.0  ;;  %v1442_v42 = vrot.slane %v1441_v44, 2 }
 0x23e   : > { %v1448_v41 = vadd.f32 %v1447_v56, %v1406_v63  ;;  %v1392_v3 = vmul.f32 %v2442_v20, %v1336_v24  ;;  %v1425_v63 = vadd.f32 %v1424_v7, %v1423_v25 }
 0x23f   : > { %v1457_v4 = vadd.f32 %v1456_v1, %v1407_v2  ;;  %v1443_v60 = vadd.f32 %v1442_v42, %v1441_v44 }
 0x240   : > { %v1449_v17 = vrot.slane %v1448_v41, 4  ;;  %v1464_v58 = vadd.f32 %v1392_v3, %v1384_v45  ;;  %v1426_v8 = vrot.slane %v1425_v63, 1 }
 0x241   : > { %v1287_v15 = vpop.f32.mrf.mxu2  ;;  %v1458_v18 = vrot.slane %v1457_v4, 4 }
 0x242   : > { %v1288_v49 = vadd.f32 %v1287_v15, %v2433_v11  ;;  %v1316_v38 = vpop.f32.mrf.mxu3  ;;  %v1450_v0 = vadd.f32 %v1449_v17, %v1448_v41 }
 0x243   : > { %v1317_v19 = vadd.f32 %v1316_v38, %v2433_v11  ;;  %v1459_v33 = vadd.f32 %v1458_v18, %v1457_v4  ;;  %v1393_v11 = vmul.f32 %v2442_v20, %v1337_v27  ;;  %v1434_v20 = vadd.f32 %v1433_v37, %v1432_v26 }
 0x244   : > { %v1344_v32 = vmax.f32 %v1288_v49, 0.0  ;;  %v1451_v51 = vrot.slane %v1450_v0, 2  ;;  %v1488_v49 = vperm.slane %v1486_v6, 0 }
 0x245   : > { %v1345_v34 = vmax.f32 %v1317_v19, 0.0  ;;  %v1460_v53 = vrot.slane %v1459_v33, 2  ;;  %v1473_v30 = vadd.f32 %v1393_v11, %v1385_v46  ;;  %v1435_v41 = vrot.slane %v1434_v20, 1 }
 0x246   : > { %v1400_v47 = vmul.f32 %v2473_v23, %v1344_v32  ;;  %v1452_v56 = vadd.f32 %v1451_v51, %v1450_v0 }
 0x247   : > { %v1401_v54 = vmul.f32 %v2473_v23, %v1345_v34  ;;  %v1461_v1 = vadd.f32 %v1460_v53, %v1459_v33  ;;  %v1415_v23 = vrot.slane %v1414_v57, 2  ;;  %v1436_v16 = vadd.f32 %v1435_v41, %v1434_v20 }
 0x248   : > { %v1465_v29 = vadd.f32 %v1464_v58, %v1400_v47  ;;  %v1453_v9 = vrot.slane %v1452_v56, 1 }
 0x249   : > { %v1290_v43 = vpop.f32.mrf.mxu2  ;;  %v1474_v2 = vadd.f32 %v1473_v30, %v1401_v54  ;;  %v1462_v10 = vrot.slane %v1461_v1, 1  ;;  %v1416_v15 = vadd.f32 %v1415_v23, %v1414_v57  ;;  %v1491_v25 = vadd.f32 %v1488_v49, %v1436_v16 }
 0x24a   : > { %v1291_v48 = vadd.f32 %v1290_v43, %v2444_v61  ;;  %v1319_v50 = vpop.f32.mrf.mxu3  ;;  %v1454_v17 = vadd.f32 %v1453_v9, %v1452_v56 }
 0x24b   : > { %v1320_v55 = vadd.f32 %v1319_v50, %v2444_v61  ;;  %v1444_v61 = vrot.slane %v1443_v60, 1  ;;  %v1463_v18 = vadd.f32 %v1462_v10, %v1461_v1  ;;  %v1417_v24 = vrot.slane %v1416_v15, 1 }
 0x24c   : > { %v1352_v59 = vmax.f32 %v1291_v48, 0.0  ;;  %v1493_v31 = vadd.f32 %v1488_v49, %v1454_v17  ;;  %v1506_v12 = vrot.slane %v1491_v25, 6 }
 0x24d   : > { %v1353_v62 = vmax.f32 %v1320_v55, 0.0  ;;  %v1445_v22 = vadd.f32 %v1444_v61, %v1443_v60  ;;  %v1494_v32 = vadd.f32 %v1488_v49, %v1463_v18  ;;  %v1418_v34 = vadd.f32 %v1417_v24, %v1416_v15 }
 0x24e   : > { %v1408_v36 = vmul.f32 %v2486_v14, %v1352_v59  ;;  %v1508_v11 = vrot.slane %v1493_v31, 4 }
 0x24f   : > { %v1409_v39 = vmul.f32 %v2486_v14, %v1353_v62  ;;  %v1427_v14 = vadd.f32 %v1426_v8, %v1425_v63  ;;  %v1492_v26 = vadd.f32 %v1488_v49, %v1445_v22  ;;  %v1509_v43 = vrot.slane %v1494_v32, 3 }
 0x250   : > { %v1466_v40 = vadd.f32 %v1465_v29, %v1408_v36  ;;  %v1489_v47 = vadd.f32 %v1488_v49, %v1418_v34 }
 0x251   : > { %v1475_v4 = vadd.f32 %v1474_v2, %v1409_v39  ;;  %v1490_v28 = vadd.f32 %v1488_v49, %v1427_v14  ;;  %v1507_v3 = vrot.slane %v1492_v26, 5  ;;  %v1519_v53 = vsel %vm1518_vm5, %v1508_v11, %v1509_v43 }
 0x252   : > { %v1467_v5 = vrot.slane %v1466_v40, 4 }
 0x253   : > { %v1476_v13 = vrot.slane %v1475_v4, 4  ;;  %v1505_v42 = vrot.slane %v1490_v28, 7  ;;  %v1515_v50 = vsel %vm1514_vm3, %v1506_v12, %v1507_v3 }
 0x254   : > { %v1468_v52 = vadd.f32 %v1467_v5, %v1466_v40 }
 0x255   : > { %v1477_v35 = vadd.f32 %v1476_v13, %v1475_v4  ;;  %v1513_v51 = vsel %vm1512_vm2, %v1489_v47, %v1505_v42 }
 0x256   : > { %v1469_v38 = vrot.slane %v1468_v52, 2  ;;  %v1517_v55 = vsel %vm1516_vm4, %v1513_v51, %v1515_v50 }
 0x257   : > { %v1478_v19 = vrot.slane %v1477_v35, 2 }
 0x258   : > { %v1470_v21 = vadd.f32 %v1469_v38, %v1468_v52 }
 0x259   : > { %v1479_v44 = vadd.f32 %v1478_v19, %v1477_v35 }
 0x25a   : > { %v1471_v27 = vrot.slane %v1470_v21, 1 }
 0x25b   : > { %v1480_v0 = vrot.slane %v1479_v44, 1 }
 0x25c   : > { %v1472_v33 = vadd.f32 %v1471_v27, %v1470_v21 }
 0x25d   : > { %v1481_v7 = vadd.f32 %v1480_v0, %v1479_v44 }
 0x25e   : > { %v1495_v37 = vadd.f32 %v1488_v49, %v1472_v33 }
 0x25f   : > { %v1496_v45 = vadd.f32 %v1488_v49, %v1481_v7 }
 0x260   : > { %v1510_v46 = vrot.slane %v1495_v37, 2 }
 0x261   : > { %v1511_v48 = vrot.slane %v1496_v45, 1 }
 0x263   : > { %v1521_v54 = vsel %vm1520_vm6, %v1510_v46, %v1511_v48 }
 0x264   : > { %v1523_v57 = vsel %vm1522_vm7, %v1519_v53, %v1521_v54 }
 0x265   : > { %v1525_v58 = vsel %vm1524_vm8, %v1517_v55, %v1523_v57 }
 0x266   : > { %1527 = vst [vmem:[%s354_s8] sm:$0xff] %v1525_v58 }
 0x267   : > { %1834 = shalt.err (!%p1831_p4)
}
 0x268   : > { %1726 = dma.vmem_to_hbm [thread:$0]  (%p1977_p10), %s1542_s27, 128, %s1544_s28, %s1529_s23  }
 0x269 PF: > { %p1737_p5 = scmp.ge.s32.totalorder %s1873_s14, 2  ;;  %s1555_s13 = sand.u32 1, %s1861_s11  }
 0x26a   : > { %s1556_s30 = scalar_lea.sflag [#allocation5], %s1555_s13 }
 0x26b   : > { %p1733_p7 = pnand %p1737_p5, %p1981_p11 }
 0x26d   : > { %p1734_p8 = pneg %p1733_p7 }
 0x26f   : > { %1856 = dma.done.wait (%p1734_p8), %s1556_s30, 128  }
 0x270   : > { %1858 = vsyncadd (%p1734_p8), %s1556_s30, 4294967168  ;;  %s2582_s15 = sld [smem:[#allocation9_spill]]  ;;  %p24_p9 = scmp.ge.s32.totalorder %s1957_s16, 6  }
 0x271   : > { %s2583_s13 = sld [smem:[#allocation10_spill]]  ;;  %s2584_s11 = smov %s1865_s12 }
 0x272   : > { %s2586_s14 = smov %s1957_s16  ;;  %26 = sbr.rel (!%p24_p9) target bundleno = 8 (0x8), region = 101 }
 0x276   : > { %s2585_s12 = smov %s2582_s15 }
 0x277   :  { %1562 = vsyncpa [#allocation4], 1 }
 0x278   :  { %1564 = vsyncpa [#allocation4 + $0x1], 1 }
 0x279   :  { %1565 = vsyncpa [#allocation5], 1 }
 0x27a   :  { %1567 = vsyncpa [#allocation5 + $0x1], 1 }

</bundles_post_ra>
